<compile_context>
chip_gen: v7x
topology: tpu7x:2x2x1
jax: 0.10.0
libtpu: 0.0.40
codegen_flags: <defaults>
</compile_context>

<pallas_src>
import jax
import jax.numpy as jnp
from jax.experimental import pallas as pl
from jax.experimental.pallas import tpu as pltpu

# ---------------- hyper-parameters (small, synthetic "args") ----------------
BATCH = 2
WINDOW = 16        # args.window
DATA_M = 8         # args.data_m
HID_R = 16         # args.hidRNN
HID_C = 8          # args.hidCNN
HID_S = 4          # args.hidSkip
CK = 4             # args.CNN_kernel
SKIP = 4           # args.skip
PT = (WINDOW - CK) // SKIP          # = 3
HW = 4             # args.highway_window
T_CONV = WINDOW - CK + 1            # = 13 (conv output length)
BP = 8                              # batch padded to one full sublane tile
OFF = T_CONV - PT * SKIP            # = 1  (first timestep used by skip GRU)
SB = SKIP * BP                      # = 32 (skip-GRU batch: phases folded in)
G1 = 3 * HID_R                      # = 48 packed GRU1 gate width [r|z|n]
GS = 3 * HID_S                      # = 12 packed skip-GRU gate width
assert BATCH <= BP

# ---- bf16 weight-slab layout (row starts aligned to the bf16 16-row tile) --
W_COLS = G1                          # 48 lanes
OFF_CONV = 0                         # (CK*DATA_M, HID_C)         = (32, 8)
OFF_G1W = 32                         # (HID_C, G1)                = (8, 48)
OFF_G1U = 48                         # (HID_R, G1)                = (16, 48)
OFF_GSW = 64                         # (HID_C, GS)                = (8, 12)
OFF_GSU = 80                         # (HID_S, GS)                = (4, 12)
OFF_L1 = 96                          # (HID_R+SKIP*HID_S, DATA_M) = (32, 8)
OFF_FIN = 128                        # (DATA_M, 1)                = (8, 1)
W_ROWS = 144

# ---- f32 bias-slab rows (width W_COLS) --------------------------------------
B_CONV, B_G1I, B_G1HN, B_GSI, B_GSHN, B_L1, B_FIN = range(7)
B_ROWS = 8


# --------------------------- Pallas kernel ----------------------------------
def lstnet_kernel(
    x_ref,        # (WINDOW, BP, DATA_M) f32   time-major, batch zero-padded
    w_ref,        # (W_ROWS, W_COLS)     bf16  packed weight slab (pre-cast)
    b_ref,        # (B_ROWS, W_COLS)     f32   packed bias slab
    hw_ref,       # (HW,)                f32   SMEM highway/AR weights
    out_ref,      # (BP, 1)              f32
    gi1_ref,      # scratch (T_CONV, BP, G1) f32  hoisted GRU1 gate inputs
    gis_ref,      # scratch (PT, SB, GS)     f32  hoisted skip-GRU gate inputs
):
    f32, bf16 = jnp.float32, jnp.bfloat16

    def mxu(a, w_bf16):
        # single-pass bf16 MXU matmul, f32 accumulation (weights pre-cast)
        return jnp.dot(a.astype(bf16), w_bf16, preferred_element_type=f32)

    # ---- Conv2d(1, hidC, (Ck, data_m)) + ReLU as ONE matmul -----------------
    # lane-concat the CK shifted views of x -> (T_CONV*BP, CK*DATA_M)
    xs = [x_ref[k:k + T_CONV].reshape(T_CONV * BP, DATA_M).astype(bf16)
          for k in range(CK)]
    xcat = jnp.concatenate(xs, axis=1)                       # (104, 32) bf16
    conv_w = w_ref[OFF_CONV:OFF_CONV + CK * DATA_M, 0:HID_C]  # (32, 8)
    conv_b = b_ref[B_CONV:B_CONV + 1, 0:HID_C]                # (1, 8)
    c2 = jnp.maximum(mxu(xcat, conv_w) + conv_b, 0.0)         # (104, 8) f32
    c2b = c2.astype(bf16)

    # ---- hoisted, lane-packed gate input projections -> VMEM scratch --------
    g1_w = w_ref[OFF_G1W:OFF_G1W + HID_C, 0:G1]               # (8, 48)
    gi1 = mxu(c2b, g1_w) + b_ref[B_G1I:B_G1I + 1, 0:G1]       # (104, 48)
    gi1_ref[...] = gi1.reshape(T_CONV, BP, G1)

    gs_w = w_ref[OFF_GSW:OFF_GSW + HID_C, 0:GS]               # (8, 12)
    gis = mxu(c2b, gs_w) + b_ref[B_GSI:B_GSI + 1, 0:GS]       # (104, 12)
    gis_ref[...] = gis[OFF * BP:].reshape(PT, SB, GS)

    # ---- GRU1 recurrence: ONE fused hidden matmul per step ------------------
    u1 = w_ref[OFF_G1U:OFF_G1U + HID_R, 0:G1]                 # (16, 48) bf16
    b1hn = b_ref[B_G1HN:B_G1HN + 1, 0:HID_R]                  # (1, 16)
    h1 = jnp.zeros((BP, HID_R), f32)
    for t in range(T_CONV):                                   # 13 serial steps
        gi_t = gi1_ref[t]                                     # (BP, 48) 1 vld
        gh = mxu(h1, u1)                                      # (BP, 48)
        rz = jax.nn.sigmoid(gi_t[:, 0:2 * HID_R] + gh[:, 0:2 * HID_R])
        r = rz[:, 0:HID_R]
        z = rz[:, HID_R:2 * HID_R]
        n = jnp.tanh(gi_t[:, 2 * HID_R:G1] + r * (gh[:, 2 * HID_R:G1] + b1hn))
        h1 = (1.0 - z) * n + z * h1                           # (BP, HID_R)

    # ---- skip GRU: SKIP phases folded into the batch dim (batch = 32) -------
    us = w_ref[OFF_GSU:OFF_GSU + HID_S, 0:GS]                 # (4, 12) bf16
    bshn = b_ref[B_GSHN:B_GSHN + 1, 0:HID_S]                  # (1, 4)
    hs = jnp.zeros((SB, HID_S), f32)
    for p in range(PT):                                       # 3 serial steps
        si_p = gis_ref[p]                                     # (SB, 12)
        gh = mxu(hs, us)                                      # (SB, 12)
        rz = jax.nn.sigmoid(si_p[:, 0:2 * HID_S] + gh[:, 0:2 * HID_S])
        r = rz[:, 0:HID_S]
        z = rz[:, HID_S:2 * HID_S]
        n = jnp.tanh(si_p[:, 2 * HID_S:GS] + r * (gh[:, 2 * HID_S:GS] + bshn))
        hs = (1.0 - z) * n + z * hs                           # (SB, HID_S)

    # ---- lane-concat hiddens -> single linear1 matmul ------------------------
    # hs row q*BP+b -> column HID_R + q*HID_S + d (matches reference order).
    hs4 = hs.reshape(SKIP, BP, HID_S)
    rcat = jnp.concatenate([h1] + [hs4[q] for q in range(SKIP)], axis=1)
    l1_w = w_ref[OFF_L1:OFF_L1 + HID_R + SKIP * HID_S, 0:DATA_M]   # (32, 8)
    # bias row already contains lin1_b + highway bias (folded host-side)
    res = mxu(rcat, l1_w) + b_ref[B_L1:B_L1 + 1, 0:DATA_M]         # (BP, M)

    # ---- highway / AR part: SMEM scalars hoisted, 4 broadcast-FMAs ----------
    hww = [hw_ref[j] for j in range(HW)]
    for j in range(HW):
        res = res + x_ref[WINDOW - HW + j] * hww[j]

    # ---- final Linear + ReLU --------------------------------------------------
    fin_w = w_ref[OFF_FIN:OFF_FIN + DATA_M, 0:1]                   # (8, 1)
    out = mxu(res, fin_w) + b_ref[B_FIN:B_FIN + 1, 0:1]
    out_ref[...] = jnp.maximum(out, 0.0)                           # (BP, 1)
    # NOTE: padded batch rows (>= BATCH) carry garbage; they are sliced off in
    # the wrapper and never reduced over in-kernel.


# ------------------------------ wrapper --------------------------------------
@jax.jit
def lstnet_pallas(x, kp):
    # layout plumbing only: time-major + pad batch to a full 8-sublane tile
    x_tm = jnp.transpose(x, (1, 0, 2))
    x_tm = jnp.pad(x_tm, ((0, 0), (0, BP - BATCH), (0, 0)))
    vmem = lambda: pl.BlockSpec(memory_space=pltpu.MemorySpace.VMEM)
    smem = lambda: pl.BlockSpec(memory_space=pltpu.MemorySpace.SMEM)
    out = pl.pallas_call(
        lstnet_kernel,
        out_shape=jax.ShapeDtypeStruct((BP, 1), jnp.float32),
        in_specs=[vmem(), vmem(), vmem(), smem()],
        out_specs=vmem(),
        scratch_shapes=[
            pltpu.VMEM((T_CONV, BP, G1), jnp.float32),   # hoisted GRU1 gates
            pltpu.VMEM((PT, SB, GS), jnp.float32),       # hoisted skip gates
        ],
        # No grid / core split on purpose: at this size the kernel is
        # latency-bound on the 13-step serial GRU chain; grid steps and a
        # 2-TC split (v7x) would be pure overhead. Revisit if BATCH spans
        # many sublane tiles.
    )(x_tm, kp["wslab"], kp["bslab"], kp["hw_w"])
    return out[:BATCH, 0]


# -------------------- deterministic parameter init ---------------------------
def init_params(key):
    ks = jax.random.split(key, 16)
    r = lambda k, s: (0.2 * jax.random.normal(k, s)).astype(jnp.float32)
    return {
        "conv_w": r(ks[0], (HID_C, 1, CK, DATA_M)),   # PyTorch OIHW
        "conv_b": r(ks[1], (HID_C,)),
        "g1_wih": r(ks[2], (3 * HID_R, HID_C)),
        "g1_whh": r(ks[3], (3 * HID_R, HID_R)),
        "g1_bih": r(ks[4], (3 * HID_R,)),
        "g1_bhh": r(ks[5], (3 * HID_R,)),
        "gs_wih": r(ks[6], (3 * HID_S, HID_C)),
        "gs_whh": r(ks[7], (3 * HID_S, HID_S)),
        "gs_bih": r(ks[8], (3 * HID_S,)),
        "gs_bhh": r(ks[9], (3 * HID_S,)),
        "lin1_w": r(ks[10], (DATA_M, HID_R + SKIP * HID_S)),
        "lin1_b": r(ks[11], (DATA_M,)),
        "hw_w":   r(ks[12], (1, HW)),
        "hw_b":   r(ks[13], (1,)),
        "fin_w":  r(ks[14], (1, DATA_M)),
        "fin_b":  r(ks[15], (1,)),
    }


def kernel_params(p):
    """Pack PyTorch-convention weights into two slabs (host-side glue only)."""
    f32 = jnp.float32

    # matmul weight blocks (right-multiply layout); gate columns are [r|z|n]
    conv_flat = p["conv_w"][:, 0].reshape(HID_C, CK * DATA_M).T   # (32, 8)
    g1_w = p["g1_wih"].T                                          # (8, 48)
    g1_u = p["g1_whh"].T                                          # (16, 48)
    gs_w = p["gs_wih"].T                                          # (8, 12)
    gs_u = p["gs_whh"].T                                          # (4, 12)
    l1_w = p["lin1_w"].T                                          # (32, 8)
    fin_w = p["fin_w"].T                                          # (8, 1)

    def put(slab, row, blk):
        r, c = blk.shape
        return slab.at[row:row + r, :c].set(blk)

    wslab = jnp.zeros((W_ROWS, W_COLS), f32)
    wslab = put(wslab, OFF_CONV, conv_flat)
    wslab = put(wslab, OFF_G1W, g1_w)
    wslab = put(wslab, OFF_G1U, g1_u)
    wslab = put(wslab, OFF_GSW, gs_w)
    wslab = put(wslab, OFF_GSU, gs_u)
    wslab = put(wslab, OFF_L1, l1_w)
    wslab = put(wslab, OFF_FIN, fin_w)
    wslab = wslab.astype(jnp.bfloat16)                 # pre-cast once, host side

    def gi_bias(bih, bhh, hid):                        # r,z input biases folded
        return jnp.concatenate([bih[:hid] + bhh[:hid],
                                bih[hid:2 * hid] + bhh[hid:2 * hid],
                                bih[2 * hid:3 * hid]])

    def putb(slab, row, vec):
        return slab.at[row, :vec.shape[0]].set(vec)

    bslab = jnp.zeros((B_ROWS, W_COLS), f32)
    bslab = putb(bslab, B_CONV, p["conv_b"])
    bslab = putb(bslab, B_G1I, gi_bias(p["g1_bih"], p["g1_bhh"], HID_R))
    bslab = putb(bslab, B_G1HN, p["g1_bhh"][2 * HID_R:])
    bslab = putb(bslab, B_GSI, gi_bias(p["gs_bih"], p["gs_bhh"], HID_S))
    bslab = putb(bslab, B_GSHN, p["gs_bhh"][2 * HID_S:])
    bslab = putb(bslab, B_L1, p["lin1_b"] + p["hw_b"][0])   # fold highway bias
    bslab = putb(bslab, B_FIN, p["fin_b"])

    return {"wslab": wslab, "bslab": bslab, "hw_w": p["hw_w"].reshape(HW)}


# ------------------------- pure-JAX reference --------------------------------
def _hdot(a, b):
    return jnp.dot(a, b, precision=jax.lax.Precision.HIGHEST)


def _gru_ref(seq, wih, whh, bih, bhh, hid):
    h = jnp.zeros((seq.shape[1], hid), jnp.float32)
    for t in range(seq.shape[0]):
        gi = _hdot(seq[t], wih.T) + bih
        gh = _hdot(h, whh.T) + bhh
        r = jax.nn.sigmoid(gi[:, :hid] + gh[:, :hid])
        z = jax.nn.sigmoid(gi[:, hid:2 * hid] + gh[:, hid:2 * hid])
        n = jnp.tanh(gi[:, 2 * hid:] + r * gh[:, 2 * hid:])
        h = (1.0 - z) * n + z * h
    return h


def lstnet_ref(x, p):
    B = x.shape[0]
    c = jax.lax.conv_general_dilated(
        x[:, None, :, :], p["conv_w"], (1, 1), "VALID",
        dimension_numbers=("NCHW", "OIHW", "NCHW"),
        precision=jax.lax.Precision.HIGHEST)
    c = jax.nn.relu(c + p["conv_b"][None, :, None, None])[:, :, :, 0]   # (B,hidC,T)
    r_seq = jnp.transpose(c, (2, 0, 1))                                  # (T,B,hidC)
    r = _gru_ref(r_seq, p["g1_wih"], p["g1_whh"], p["g1_bih"], p["g1_bhh"], HID_R)
    s = c[:, :, -PT * SKIP:].reshape(B, HID_C, PT, SKIP)
    s = jnp.transpose(s, (2, 0, 3, 1)).reshape(PT, B * SKIP, HID_C)
    hs = _gru_ref(s, p["gs_wih"], p["gs_whh"], p["gs_bih"], p["gs_bhh"], HID_S)
    hs = hs.reshape(B, SKIP * HID_S)
    res = _hdot(jnp.concatenate([r, hs], axis=1), p["lin1_w"].T) + p["lin1_b"]
    zx = jnp.transpose(x[:, -HW:, :], (0, 2, 1)).reshape(-1, HW)
    z = (_hdot(zx, p["hw_w"].T) + p["hw_b"]).reshape(-1, DATA_M)
    res = res + z
    out = jax.nn.relu(_hdot(res, p["fin_w"].T) + p["fin_b"])
    return out.reshape(-1)


# --------------------------------- main ---------------------------------------
if __name__ == "__main__":
    key = jax.random.PRNGKey(0)
    pkey, xkey = jax.random.split(key)
    params = init_params(pkey)
    kparams = kernel_params(params)

    x = jax.random.normal(xkey, (BATCH, WINDOW, DATA_M), dtype=jnp.float32)

    out = jax.block_until_ready(lstnet_pallas(x, kparams))
    ref = lstnet_ref(x, params)

    assert out.shape == (BATCH,), out.shape
    if not bool(jnp.allclose(out, ref, rtol=2e-2, atol=2e-2)):
        raise AssertionError(f"mismatch: pallas={out} ref={ref}")
    print("KERNEL_OK")
</pallas_src>

<mosaic_0001>
module attributes {stable_mosaic.version = 11 : i64} {
  func.func @lstnet_kernel(%arg0: memref<16x8x8xf32, #tpu.memory_space<vmem>>, %arg1: memref<144x48xbf16, #tpu.memory_space<vmem>>, %arg2: memref<8x48xf32, #tpu.memory_space<vmem>>, %arg3: memref<4xf32, #tpu.memory_space<smem>>, %arg4: memref<8x1xf32, #tpu.memory_space<vmem>>, %arg5: memref<13x8x48xf32, #tpu.memory_space<vmem>>, %arg6: memref<3x32x12xf32, #tpu.memory_space<vmem>>) attributes {dimension_semantics = [], scalar_prefetch = 0 : i64, scratch_operands = 2 : i64, tpu.core_type = #tpu.core_type<tc>} {
    %c0 = arith.constant 0 : index
    %c0_0 = arith.constant 0 : index
    %c0_1 = arith.constant 0 : index
    %0 = vector.load %arg0[%c0, %c0_0, %c0_1] : memref<16x8x8xf32, #tpu.memory_space<vmem>>, vector<13x8x8xf32>
    %1 = vector.shape_cast %0 : vector<13x8x8xf32> to vector<104x8xf32>
    %2 = arith.truncf %1 : vector<104x8xf32> to vector<104x8xbf16>
    %c1 = arith.constant 1 : index
    %c0_2 = arith.constant 0 : index
    %c0_3 = arith.constant 0 : index
    %3 = vector.load %arg0[%c1, %c0_2, %c0_3] : memref<16x8x8xf32, #tpu.memory_space<vmem>>, vector<13x8x8xf32>
    %4 = vector.shape_cast %3 : vector<13x8x8xf32> to vector<104x8xf32>
    %5 = arith.truncf %4 : vector<104x8xf32> to vector<104x8xbf16>
    %c2 = arith.constant 2 : index
    %c0_4 = arith.constant 0 : index
    %c0_5 = arith.constant 0 : index
    %6 = vector.load %arg0[%c2, %c0_4, %c0_5] : memref<16x8x8xf32, #tpu.memory_space<vmem>>, vector<13x8x8xf32>
    %7 = vector.shape_cast %6 : vector<13x8x8xf32> to vector<104x8xf32>
    %8 = arith.truncf %7 : vector<104x8xf32> to vector<104x8xbf16>
    %c3 = arith.constant 3 : index
    %c0_6 = arith.constant 0 : index
    %c0_7 = arith.constant 0 : index
    %9 = vector.load %arg0[%c3, %c0_6, %c0_7] : memref<16x8x8xf32, #tpu.memory_space<vmem>>, vector<13x8x8xf32>
    %10 = vector.shape_cast %9 : vector<13x8x8xf32> to vector<104x8xf32>
    %11 = arith.truncf %10 : vector<104x8xf32> to vector<104x8xbf16>
    %12 = tpu.concatenate %2, %5, %8, %11 in 1 : vector<104x8xbf16>, vector<104x8xbf16>, vector<104x8xbf16>, vector<104x8xbf16> -> vector<104x32xbf16>
    %c0_8 = arith.constant 0 : index
    %c0_9 = arith.constant 0 : index
    %13 = vector.load %arg1[%c0_8, %c0_9] : memref<144x48xbf16, #tpu.memory_space<vmem>>, vector<32x8xbf16>
    %c0_10 = arith.constant 0 : index
    %c0_11 = arith.constant 0 : index
    %14 = vector.load %arg2[%c0_10, %c0_11] : memref<8x48xf32, #tpu.memory_space<vmem>>, vector<1x8xf32>
    %cst = arith.constant dense<0.000000e+00> : vector<104x8xf32>
    %15 = tpu.matmul %12, %13, %cst {dimension_numbers = #tpu.dot_dimension_numbers<[1], [0], [0], [1], [0, 0, 1, 1], [], []>} : vector<104x32xbf16>, vector<32x8xbf16>, vector<104x8xf32> -> vector<104x8xf32>
    %16 = vector.broadcast %14 : vector<1x8xf32> to vector<104x8xf32>
    %17 = arith.addf %15, %16 : vector<104x8xf32>
    %cst_12 = arith.constant 0.000000e+00 : f32
    %18 = vector.broadcast %cst_12 : f32 to vector<104x8xf32>
    %19 = arith.maximumf %17, %18 : vector<104x8xf32>
    %20 = arith.truncf %19 : vector<104x8xf32> to vector<104x8xbf16>
    %c32 = arith.constant 32 : index
    %c0_13 = arith.constant 0 : index
    %21 = vector.load %arg1[%c32, %c0_13] : memref<144x48xbf16, #tpu.memory_space<vmem>>, vector<8x48xbf16>
    %cst_14 = arith.constant dense<0.000000e+00> : vector<104x48xf32>
    %22 = tpu.matmul %20, %21, %cst_14 {dimension_numbers = #tpu.dot_dimension_numbers<[1], [0], [0], [1], [0, 0, 1, 1], [], []>} : vector<104x8xbf16>, vector<8x48xbf16>, vector<104x48xf32> -> vector<104x48xf32>
    %c1_15 = arith.constant 1 : index
    %c0_16 = arith.constant 0 : index
    %23 = vector.load %arg2[%c1_15, %c0_16] : memref<8x48xf32, #tpu.memory_space<vmem>>, vector<1x48xf32>
    %24 = vector.broadcast %23 : vector<1x48xf32> to vector<104x48xf32>
    %25 = arith.addf %22, %24 : vector<104x48xf32>
    %26 = vector.shape_cast %25 : vector<104x48xf32> to vector<13x8x48xf32>
    %c0_17 = arith.constant 0 : index
    %c0_18 = arith.constant 0 : index
    %c0_19 = arith.constant 0 : index
    %27 = vector.load %arg5[%c0_17, %c0_18, %c0_19] : memref<13x8x48xf32, #tpu.memory_space<vmem>>, vector<13x8x48xf32>
    tpu.vector_store %arg5[%c0_17, %c0_18, %c0_19], %26 {strides = array<i32>} : memref<13x8x48xf32, #tpu.memory_space<vmem>>, vector<13x8x48xf32>,
    %c64 = arith.constant 64 : index
    %c0_20 = arith.constant 0 : index
    %28 = vector.load %arg1[%c64, %c0_20] : memref<144x48xbf16, #tpu.memory_space<vmem>>, vector<8x12xbf16>
    %cst_21 = arith.constant dense<0.000000e+00> : vector<104x12xf32>
    %29 = tpu.matmul %20, %28, %cst_21 {dimension_numbers = #tpu.dot_dimension_numbers<[1], [0], [0], [1], [0, 0, 1, 1], [], []>} : vector<104x8xbf16>, vector<8x12xbf16>, vector<104x12xf32> -> vector<104x12xf32>
    %c3_22 = arith.constant 3 : index
    %c0_23 = arith.constant 0 : index
    %30 = vector.load %arg2[%c3_22, %c0_23] : memref<8x48xf32, #tpu.memory_space<vmem>>, vector<1x12xf32>
    %31 = vector.broadcast %30 : vector<1x12xf32> to vector<104x12xf32>
    %32 = arith.addf %29, %31 : vector<104x12xf32>
    %33 = vector.extract_strided_slice %32 {offsets = [8, 0], sizes = [96, 12], strides = [1, 1]} : vector<104x12xf32> to vector<96x12xf32>
    %34 = vector.shape_cast %33 : vector<96x12xf32> to vector<3x32x12xf32>
    %c0_24 = arith.constant 0 : index
    %c0_25 = arith.constant 0 : index
    %c0_26 = arith.constant 0 : index
    %35 = vector.load %arg6[%c0_24, %c0_25, %c0_26] : memref<3x32x12xf32, #tpu.memory_space<vmem>>, vector<3x32x12xf32>
    tpu.vector_store %arg6[%c0_24, %c0_25, %c0_26], %34 {strides = array<i32>} : memref<3x32x12xf32, #tpu.memory_space<vmem>>, vector<3x32x12xf32>,
    %c48 = arith.constant 48 : index
    %c0_27 = arith.constant 0 : index
    %36 = vector.load %arg1[%c48, %c0_27] : memref<144x48xbf16, #tpu.memory_space<vmem>>, vector<16x48xbf16>
    %c2_28 = arith.constant 2 : index
    %c0_29 = arith.constant 0 : index
    %37 = vector.load %arg2[%c2_28, %c0_29] : memref<8x48xf32, #tpu.memory_space<vmem>>, vector<1x16xf32>
    %cst_30 = arith.constant 0.000000e+00 : f32
    %38 = vector.broadcast %cst_30 : f32 to vector<8x16xf32>
    %c0_31 = arith.constant 0 : index
    %c0_32 = arith.constant 0 : index
    %c0_33 = arith.constant 0 : index
    %39 = vector.load %arg5[%c0_31, %c0_32, %c0_33] : memref<13x8x48xf32, #tpu.memory_space<vmem>>, vector<1x8x48xf32>
    %40 = vector.shape_cast %39 : vector<1x8x48xf32> to vector<8x48xf32>
    %41 = arith.truncf %38 : vector<8x16xf32> to vector<8x16xbf16>
    %cst_34 = arith.constant dense<0.000000e+00> : vector<8x48xf32>
    %42 = tpu.matmul %41, %36, %cst_34 {dimension_numbers = #tpu.dot_dimension_numbers<[1], [0], [0], [1], [0, 0, 1, 1], [], []>} : vector<8x16xbf16>, vector<16x48xbf16>, vector<8x48xf32> -> vector<8x48xf32>
    %43 = vector.extract_strided_slice %40 {offsets = [0, 0], sizes = [8, 32], strides = [1, 1]} : vector<8x48xf32> to vector<8x32xf32>
    %44 = vector.extract_strided_slice %42 {offsets = [0, 0], sizes = [8, 32], strides = [1, 1]} : vector<8x48xf32> to vector<8x32xf32>
    %45 = arith.addf %43, %44 : vector<8x32xf32>
    %46 = arith.negf %45 : vector<8x32xf32>
    %47 = math.exp %46 : vector<8x32xf32>
    %cst_35 = arith.constant 1.000000e+00 : f32
    %48 = vector.broadcast %cst_35 : f32 to vector<8x32xf32>
    %49 = arith.addf %48, %47 : vector<8x32xf32>
    %50 = arith.divf %48, %49 : vector<8x32xf32>
    %51 = vector.extract_strided_slice %50 {offsets = [0, 0], sizes = [8, 16], strides = [1, 1]} : vector<8x32xf32> to vector<8x16xf32>
    %52 = vector.extract_strided_slice %50 {offsets = [0, 16], sizes = [8, 16], strides = [1, 1]} : vector<8x32xf32> to vector<8x16xf32>
    %53 = vector.extract_strided_slice %40 {offsets = [0, 32], sizes = [8, 16], strides = [1, 1]} : vector<8x48xf32> to vector<8x16xf32>
    %54 = vector.extract_strided_slice %42 {offsets = [0, 32], sizes = [8, 16], strides = [1, 1]} : vector<8x48xf32> to vector<8x16xf32>
    %55 = vector.broadcast %37 : vector<1x16xf32> to vector<8x16xf32>
    %56 = arith.addf %54, %55 : vector<8x16xf32>
    %57 = arith.mulf %51, %56 : vector<8x16xf32>
    %58 = arith.addf %53, %57 : vector<8x16xf32>
    %59 = math.tanh %58 : vector<8x16xf32>
    %cst_36 = arith.constant 1.000000e+00 : f32
    %60 = vector.broadcast %cst_36 : f32 to vector<8x16xf32>
    %61 = arith.subf %60, %52 : vector<8x16xf32>
    %62 = arith.mulf %61, %59 : vector<8x16xf32>
    %63 = arith.mulf %52, %38 : vector<8x16xf32>
    %64 = arith.addf %62, %63 : vector<8x16xf32>
    %c1_37 = arith.constant 1 : index
    %c0_38 = arith.constant 0 : index
    %c0_39 = arith.constant 0 : index
    %65 = vector.load %arg5[%c1_37, %c0_38, %c0_39] : memref<13x8x48xf32, #tpu.memory_space<vmem>>, vector<1x8x48xf32>
    %66 = vector.shape_cast %65 : vector<1x8x48xf32> to vector<8x48xf32>
    %67 = arith.truncf %64 : vector<8x16xf32> to vector<8x16xbf16>
    %cst_40 = arith.constant dense<0.000000e+00> : vector<8x48xf32>
    %68 = tpu.matmul %67, %36, %cst_40 {dimension_numbers = #tpu.dot_dimension_numbers<[1], [0], [0], [1], [0, 0, 1, 1], [], []>} : vector<8x16xbf16>, vector<16x48xbf16>, vector<8x48xf32> -> vector<8x48xf32>
    %69 = vector.extract_strided_slice %66 {offsets = [0, 0], sizes = [8, 32], strides = [1, 1]} : vector<8x48xf32> to vector<8x32xf32>
    %70 = vector.extract_strided_slice %68 {offsets = [0, 0], sizes = [8, 32], strides = [1, 1]} : vector<8x48xf32> to vector<8x32xf32>
    %71 = arith.addf %69, %70 : vector<8x32xf32>
    %72 = arith.negf %71 : vector<8x32xf32>
    %73 = math.exp %72 : vector<8x32xf32>
    %cst_41 = arith.constant 1.000000e+00 : f32
    %74 = vector.broadcast %cst_41 : f32 to vector<8x32xf32>
    %75 = arith.addf %74, %73 : vector<8x32xf32>
    %76 = arith.divf %74, %75 : vector<8x32xf32>
    %77 = vector.extract_strided_slice %76 {offsets = [0, 0], sizes = [8, 16], strides = [1, 1]} : vector<8x32xf32> to vector<8x16xf32>
    %78 = vector.extract_strided_slice %76 {offsets = [0, 16], sizes = [8, 16], strides = [1, 1]} : vector<8x32xf32> to vector<8x16xf32>
    %79 = vector.extract_strided_slice %66 {offsets = [0, 32], sizes = [8, 16], strides = [1, 1]} : vector<8x48xf32> to vector<8x16xf32>
    %80 = vector.extract_strided_slice %68 {offsets = [0, 32], sizes = [8, 16], strides = [1, 1]} : vector<8x48xf32> to vector<8x16xf32>
    %81 = vector.broadcast %37 : vector<1x16xf32> to vector<8x16xf32>
    %82 = arith.addf %80, %81 : vector<8x16xf32>
    %83 = arith.mulf %77, %82 : vector<8x16xf32>
    %84 = arith.addf %79, %83 : vector<8x16xf32>
    %85 = math.tanh %84 : vector<8x16xf32>
    %cst_42 = arith.constant 1.000000e+00 : f32
    %86 = vector.broadcast %cst_42 : f32 to vector<8x16xf32>
    %87 = arith.subf %86, %78 : vector<8x16xf32>
    %88 = arith.mulf %87, %85 : vector<8x16xf32>
    %89 = arith.mulf %78, %64 : vector<8x16xf32>
    %90 = arith.addf %88, %89 : vector<8x16xf32>
    %c2_43 = arith.constant 2 : index
    %c0_44 = arith.constant 0 : index
    %c0_45 = arith.constant 0 : index
    %91 = vector.load %arg5[%c2_43, %c0_44, %c0_45] : memref<13x8x48xf32, #tpu.memory_space<vmem>>, vector<1x8x48xf32>
    %92 = vector.shape_cast %91 : vector<1x8x48xf32> to vector<8x48xf32>
    %93 = arith.truncf %90 : vector<8x16xf32> to vector<8x16xbf16>
    %cst_46 = arith.constant dense<0.000000e+00> : vector<8x48xf32>
    %94 = tpu.matmul %93, %36, %cst_46 {dimension_numbers = #tpu.dot_dimension_numbers<[1], [0], [0], [1], [0, 0, 1, 1], [], []>} : vector<8x16xbf16>, vector<16x48xbf16>, vector<8x48xf32> -> vector<8x48xf32>
    %95 = vector.extract_strided_slice %92 {offsets = [0, 0], sizes = [8, 32], strides = [1, 1]} : vector<8x48xf32> to vector<8x32xf32>
    %96 = vector.extract_strided_slice %94 {offsets = [0, 0], sizes = [8, 32], strides = [1, 1]} : vector<8x48xf32> to vector<8x32xf32>
    %97 = arith.addf %95, %96 : vector<8x32xf32>
    %98 = arith.negf %97 : vector<8x32xf32>
    %99 = math.exp %98 : vector<8x32xf32>
    %cst_47 = arith.constant 1.000000e+00 : f32
    %100 = vector.broadcast %cst_47 : f32 to vector<8x32xf32>
    %101 = arith.addf %100, %99 : vector<8x32xf32>
    %102 = arith.divf %100, %101 : vector<8x32xf32>
    %103 = vector.extract_strided_slice %102 {offsets = [0, 0], sizes = [8, 16], strides = [1, 1]} : vector<8x32xf32> to vector<8x16xf32>
    %104 = vector.extract_strided_slice %102 {offsets = [0, 16], sizes = [8, 16], strides = [1, 1]} : vector<8x32xf32> to vector<8x16xf32>
    %105 = vector.extract_strided_slice %92 {offsets = [0, 32], sizes = [8, 16], strides = [1, 1]} : vector<8x48xf32> to vector<8x16xf32>
    %106 = vector.extract_strided_slice %94 {offsets = [0, 32], sizes = [8, 16], strides = [1, 1]} : vector<8x48xf32> to vector<8x16xf32>
    %107 = vector.broadcast %37 : vector<1x16xf32> to vector<8x16xf32>
    %108 = arith.addf %106, %107 : vector<8x16xf32>
    %109 = arith.mulf %103, %108 : vector<8x16xf32>
    %110 = arith.addf %105, %109 : vector<8x16xf32>
    %111 = math.tanh %110 : vector<8x16xf32>
    %cst_48 = arith.constant 1.000000e+00 : f32
    %112 = vector.broadcast %cst_48 : f32 to vector<8x16xf32>
    %113 = arith.subf %112, %104 : vector<8x16xf32>
    %114 = arith.mulf %113, %111 : vector<8x16xf32>
    %115 = arith.mulf %104, %90 : vector<8x16xf32>
    %116 = arith.addf %114, %115 : vector<8x16xf32>
    %c3_49 = arith.constant 3 : index
    %c0_50 = arith.constant 0 : index
    %c0_51 = arith.constant 0 : index
    %117 = vector.load %arg5[%c3_49, %c0_50, %c0_51] : memref<13x8x48xf32, #tpu.memory_space<vmem>>, vector<1x8x48xf32>
    %118 = vector.shape_cast %117 : vector<1x8x48xf32> to vector<8x48xf32>
    %119 = arith.truncf %116 : vector<8x16xf32> to vector<8x16xbf16>
    %cst_52 = arith.constant dense<0.000000e+00> : vector<8x48xf32>
    %120 = tpu.matmul %119, %36, %cst_52 {dimension_numbers = #tpu.dot_dimension_numbers<[1], [0], [0], [1], [0, 0, 1, 1], [], []>} : vector<8x16xbf16>, vector<16x48xbf16>, vector<8x48xf32> -> vector<8x48xf32>
    %121 = vector.extract_strided_slice %118 {offsets = [0, 0], sizes = [8, 32], strides = [1, 1]} : vector<8x48xf32> to vector<8x32xf32>
    %122 = vector.extract_strided_slice %120 {offsets = [0, 0], sizes = [8, 32], strides = [1, 1]} : vector<8x48xf32> to vector<8x32xf32>
    %123 = arith.addf %121, %122 : vector<8x32xf32>
    %124 = arith.negf %123 : vector<8x32xf32>
    %125 = math.exp %124 : vector<8x32xf32>
    %cst_53 = arith.constant 1.000000e+00 : f32
    %126 = vector.broadcast %cst_53 : f32 to vector<8x32xf32>
    %127 = arith.addf %126, %125 : vector<8x32xf32>
    %128 = arith.divf %126, %127 : vector<8x32xf32>
    %129 = vector.extract_strided_slice %128 {offsets = [0, 0], sizes = [8, 16], strides = [1, 1]} : vector<8x32xf32> to vector<8x16xf32>
    %130 = vector.extract_strided_slice %128 {offsets = [0, 16], sizes = [8, 16], strides = [1, 1]} : vector<8x32xf32> to vector<8x16xf32>
    %131 = vector.extract_strided_slice %118 {offsets = [0, 32], sizes = [8, 16], strides = [1, 1]} : vector<8x48xf32> to vector<8x16xf32>
    %132 = vector.extract_strided_slice %120 {offsets = [0, 32], sizes = [8, 16], strides = [1, 1]} : vector<8x48xf32> to vector<8x16xf32>
    %133 = vector.broadcast %37 : vector<1x16xf32> to vector<8x16xf32>
    %134 = arith.addf %132, %133 : vector<8x16xf32>
    %135 = arith.mulf %129, %134 : vector<8x16xf32>
    %136 = arith.addf %131, %135 : vector<8x16xf32>
    %137 = math.tanh %136 : vector<8x16xf32>
    %cst_54 = arith.constant 1.000000e+00 : f32
    %138 = vector.broadcast %cst_54 : f32 to vector<8x16xf32>
    %139 = arith.subf %138, %130 : vector<8x16xf32>
    %140 = arith.mulf %139, %137 : vector<8x16xf32>
    %141 = arith.mulf %130, %116 : vector<8x16xf32>
    %142 = arith.addf %140, %141 : vector<8x16xf32>
    %c4 = arith.constant 4 : index
    %c0_55 = arith.constant 0 : index
    %c0_56 = arith.constant 0 : index
    %143 = vector.load %arg5[%c4, %c0_55, %c0_56] : memref<13x8x48xf32, #tpu.memory_space<vmem>>, vector<1x8x48xf32>
    %144 = vector.shape_cast %143 : vector<1x8x48xf32> to vector<8x48xf32>
    %145 = arith.truncf %142 : vector<8x16xf32> to vector<8x16xbf16>
    %cst_57 = arith.constant dense<0.000000e+00> : vector<8x48xf32>
    %146 = tpu.matmul %145, %36, %cst_57 {dimension_numbers = #tpu.dot_dimension_numbers<[1], [0], [0], [1], [0, 0, 1, 1], [], []>} : vector<8x16xbf16>, vector<16x48xbf16>, vector<8x48xf32> -> vector<8x48xf32>
    %147 = vector.extract_strided_slice %144 {offsets = [0, 0], sizes = [8, 32], strides = [1, 1]} : vector<8x48xf32> to vector<8x32xf32>
    %148 = vector.extract_strided_slice %146 {offsets = [0, 0], sizes = [8, 32], strides = [1, 1]} : vector<8x48xf32> to vector<8x32xf32>
    %149 = arith.addf %147, %148 : vector<8x32xf32>
    %150 = arith.negf %149 : vector<8x32xf32>
    %151 = math.exp %150 : vector<8x32xf32>
    %cst_58 = arith.constant 1.000000e+00 : f32
    %152 = vector.broadcast %cst_58 : f32 to vector<8x32xf32>
    %153 = arith.addf %152, %151 : vector<8x32xf32>
    %154 = arith.divf %152, %153 : vector<8x32xf32>
    %155 = vector.extract_strided_slice %154 {offsets = [0, 0], sizes = [8, 16], strides = [1, 1]} : vector<8x32xf32> to vector<8x16xf32>
    %156 = vector.extract_strided_slice %154 {offsets = [0, 16], sizes = [8, 16], strides = [1, 1]} : vector<8x32xf32> to vector<8x16xf32>
    %157 = vector.extract_strided_slice %144 {offsets = [0, 32], sizes = [8, 16], strides = [1, 1]} : vector<8x48xf32> to vector<8x16xf32>
    %158 = vector.extract_strided_slice %146 {offsets = [0, 32], sizes = [8, 16], strides = [1, 1]} : vector<8x48xf32> to vector<8x16xf32>
    %159 = vector.broadcast %37 : vector<1x16xf32> to vector<8x16xf32>
    %160 = arith.addf %158, %159 : vector<8x16xf32>
    %161 = arith.mulf %155, %160 : vector<8x16xf32>
    %162 = arith.addf %157, %161 : vector<8x16xf32>
    %163 = math.tanh %162 : vector<8x16xf32>
    %cst_59 = arith.constant 1.000000e+00 : f32
    %164 = vector.broadcast %cst_59 : f32 to vector<8x16xf32>
    %165 = arith.subf %164, %156 : vector<8x16xf32>
    %166 = arith.mulf %165, %163 : vector<8x16xf32>
    %167 = arith.mulf %156, %142 : vector<8x16xf32>
    %168 = arith.addf %166, %167 : vector<8x16xf32>
    %c5 = arith.constant 5 : index
    %c0_60 = arith.constant 0 : index
    %c0_61 = arith.constant 0 : index
    %169 = vector.load %arg5[%c5, %c0_60, %c0_61] : memref<13x8x48xf32, #tpu.memory_space<vmem>>, vector<1x8x48xf32>
    %170 = vector.shape_cast %169 : vector<1x8x48xf32> to vector<8x48xf32>
    %171 = arith.truncf %168 : vector<8x16xf32> to vector<8x16xbf16>
    %cst_62 = arith.constant dense<0.000000e+00> : vector<8x48xf32>
    %172 = tpu.matmul %171, %36, %cst_62 {dimension_numbers = #tpu.dot_dimension_numbers<[1], [0], [0], [1], [0, 0, 1, 1], [], []>} : vector<8x16xbf16>, vector<16x48xbf16>, vector<8x48xf32> -> vector<8x48xf32>
    %173 = vector.extract_strided_slice %170 {offsets = [0, 0], sizes = [8, 32], strides = [1, 1]} : vector<8x48xf32> to vector<8x32xf32>
    %174 = vector.extract_strided_slice %172 {offsets = [0, 0], sizes = [8, 32], strides = [1, 1]} : vector<8x48xf32> to vector<8x32xf32>
    %175 = arith.addf %173, %174 : vector<8x32xf32>
    %176 = arith.negf %175 : vector<8x32xf32>
    %177 = math.exp %176 : vector<8x32xf32>
    %cst_63 = arith.constant 1.000000e+00 : f32
    %178 = vector.broadcast %cst_63 : f32 to vector<8x32xf32>
    %179 = arith.addf %178, %177 : vector<8x32xf32>
    %180 = arith.divf %178, %179 : vector<8x32xf32>
    %181 = vector.extract_strided_slice %180 {offsets = [0, 0], sizes = [8, 16], strides = [1, 1]} : vector<8x32xf32> to vector<8x16xf32>
    %182 = vector.extract_strided_slice %180 {offsets = [0, 16], sizes = [8, 16], strides = [1, 1]} : vector<8x32xf32> to vector<8x16xf32>
    %183 = vector.extract_strided_slice %170 {offsets = [0, 32], sizes = [8, 16], strides = [1, 1]} : vector<8x48xf32> to vector<8x16xf32>
    %184 = vector.extract_strided_slice %172 {offsets = [0, 32], sizes = [8, 16], strides = [1, 1]} : vector<8x48xf32> to vector<8x16xf32>
    %185 = vector.broadcast %37 : vector<1x16xf32> to vector<8x16xf32>
    %186 = arith.addf %184, %185 : vector<8x16xf32>
    %187 = arith.mulf %181, %186 : vector<8x16xf32>
    %188 = arith.addf %183, %187 : vector<8x16xf32>
    %189 = math.tanh %188 : vector<8x16xf32>
    %cst_64 = arith.constant 1.000000e+00 : f32
    %190 = vector.broadcast %cst_64 : f32 to vector<8x16xf32>
    %191 = arith.subf %190, %182 : vector<8x16xf32>
    %192 = arith.mulf %191, %189 : vector<8x16xf32>
    %193 = arith.mulf %182, %168 : vector<8x16xf32>
    %194 = arith.addf %192, %193 : vector<8x16xf32>
    %c6 = arith.constant 6 : index
    %c0_65 = arith.constant 0 : index
    %c0_66 = arith.constant 0 : index
    %195 = vector.load %arg5[%c6, %c0_65, %c0_66] : memref<13x8x48xf32, #tpu.memory_space<vmem>>, vector<1x8x48xf32>
    %196 = vector.shape_cast %195 : vector<1x8x48xf32> to vector<8x48xf32>
    %197 = arith.truncf %194 : vector<8x16xf32> to vector<8x16xbf16>
    %cst_67 = arith.constant dense<0.000000e+00> : vector<8x48xf32>
    %198 = tpu.matmul %197, %36, %cst_67 {dimension_numbers = #tpu.dot_dimension_numbers<[1], [0], [0], [1], [0, 0, 1, 1], [], []>} : vector<8x16xbf16>, vector<16x48xbf16>, vector<8x48xf32> -> vector<8x48xf32>
    %199 = vector.extract_strided_slice %196 {offsets = [0, 0], sizes = [8, 32], strides = [1, 1]} : vector<8x48xf32> to vector<8x32xf32>
    %200 = vector.extract_strided_slice %198 {offsets = [0, 0], sizes = [8, 32], strides = [1, 1]} : vector<8x48xf32> to vector<8x32xf32>
    %201 = arith.addf %199, %200 : vector<8x32xf32>
    %202 = arith.negf %201 : vector<8x32xf32>
    %203 = math.exp %202 : vector<8x32xf32>
    %cst_68 = arith.constant 1.000000e+00 : f32
    %204 = vector.broadcast %cst_68 : f32 to vector<8x32xf32>
    %205 = arith.addf %204, %203 : vector<8x32xf32>
    %206 = arith.divf %204, %205 : vector<8x32xf32>
    %207 = vector.extract_strided_slice %206 {offsets = [0, 0], sizes = [8, 16], strides = [1, 1]} : vector<8x32xf32> to vector<8x16xf32>
    %208 = vector.extract_strided_slice %206 {offsets = [0, 16], sizes = [8, 16], strides = [1, 1]} : vector<8x32xf32> to vector<8x16xf32>
    %209 = vector.extract_strided_slice %196 {offsets = [0, 32], sizes = [8, 16], strides = [1, 1]} : vector<8x48xf32> to vector<8x16xf32>
    %210 = vector.extract_strided_slice %198 {offsets = [0, 32], sizes = [8, 16], strides = [1, 1]} : vector<8x48xf32> to vector<8x16xf32>
    %211 = vector.broadcast %37 : vector<1x16xf32> to vector<8x16xf32>
    %212 = arith.addf %210, %211 : vector<8x16xf32>
    %213 = arith.mulf %207, %212 : vector<8x16xf32>
    %214 = arith.addf %209, %213 : vector<8x16xf32>
    %215 = math.tanh %214 : vector<8x16xf32>
    %cst_69 = arith.constant 1.000000e+00 : f32
    %216 = vector.broadcast %cst_69 : f32 to vector<8x16xf32>
    %217 = arith.subf %216, %208 : vector<8x16xf32>
    %218 = arith.mulf %217, %215 : vector<8x16xf32>
    %219 = arith.mulf %208, %194 : vector<8x16xf32>
    %220 = arith.addf %218, %219 : vector<8x16xf32>
    %c7 = arith.constant 7 : index
    %c0_70 = arith.constant 0 : index
    %c0_71 = arith.constant 0 : index
    %221 = vector.load %arg5[%c7, %c0_70, %c0_71] : memref<13x8x48xf32, #tpu.memory_space<vmem>>, vector<1x8x48xf32>
    %222 = vector.shape_cast %221 : vector<1x8x48xf32> to vector<8x48xf32>
    %223 = arith.truncf %220 : vector<8x16xf32> to vector<8x16xbf16>
    %cst_72 = arith.constant dense<0.000000e+00> : vector<8x48xf32>
    %224 = tpu.matmul %223, %36, %cst_72 {dimension_numbers = #tpu.dot_dimension_numbers<[1], [0], [0], [1], [0, 0, 1, 1], [], []>} : vector<8x16xbf16>, vector<16x48xbf16>, vector<8x48xf32> -> vector<8x48xf32>
    %225 = vector.extract_strided_slice %222 {offsets = [0, 0], sizes = [8, 32], strides = [1, 1]} : vector<8x48xf32> to vector<8x32xf32>
    %226 = vector.extract_strided_slice %224 {offsets = [0, 0], sizes = [8, 32], strides = [1, 1]} : vector<8x48xf32> to vector<8x32xf32>
    %227 = arith.addf %225, %226 : vector<8x32xf32>
    %228 = arith.negf %227 : vector<8x32xf32>
    %229 = math.exp %228 : vector<8x32xf32>
    %cst_73 = arith.constant 1.000000e+00 : f32
    %230 = vector.broadcast %cst_73 : f32 to vector<8x32xf32>
    %231 = arith.addf %230, %229 : vector<8x32xf32>
    %232 = arith.divf %230, %231 : vector<8x32xf32>
    %233 = vector.extract_strided_slice %232 {offsets = [0, 0], sizes = [8, 16], strides = [1, 1]} : vector<8x32xf32> to vector<8x16xf32>
    %234 = vector.extract_strided_slice %232 {offsets = [0, 16], sizes = [8, 16], strides = [1, 1]} : vector<8x32xf32> to vector<8x16xf32>
    %235 = vector.extract_strided_slice %222 {offsets = [0, 32], sizes = [8, 16], strides = [1, 1]} : vector<8x48xf32> to vector<8x16xf32>
    %236 = vector.extract_strided_slice %224 {offsets = [0, 32], sizes = [8, 16], strides = [1, 1]} : vector<8x48xf32> to vector<8x16xf32>
    %237 = vector.broadcast %37 : vector<1x16xf32> to vector<8x16xf32>
    %238 = arith.addf %236, %237 : vector<8x16xf32>
    %239 = arith.mulf %233, %238 : vector<8x16xf32>
    %240 = arith.addf %235, %239 : vector<8x16xf32>
    %241 = math.tanh %240 : vector<8x16xf32>
    %cst_74 = arith.constant 1.000000e+00 : f32
    %242 = vector.broadcast %cst_74 : f32 to vector<8x16xf32>
    %243 = arith.subf %242, %234 : vector<8x16xf32>
    %244 = arith.mulf %243, %241 : vector<8x16xf32>
    %245 = arith.mulf %234, %220 : vector<8x16xf32>
    %246 = arith.addf %244, %245 : vector<8x16xf32>
    %c8 = arith.constant 8 : index
    %c0_75 = arith.constant 0 : index
    %c0_76 = arith.constant 0 : index
    %247 = vector.load %arg5[%c8, %c0_75, %c0_76] : memref<13x8x48xf32, #tpu.memory_space<vmem>>, vector<1x8x48xf32>
    %248 = vector.shape_cast %247 : vector<1x8x48xf32> to vector<8x48xf32>
    %249 = arith.truncf %246 : vector<8x16xf32> to vector<8x16xbf16>
    %cst_77 = arith.constant dense<0.000000e+00> : vector<8x48xf32>
    %250 = tpu.matmul %249, %36, %cst_77 {dimension_numbers = #tpu.dot_dimension_numbers<[1], [0], [0], [1], [0, 0, 1, 1], [], []>} : vector<8x16xbf16>, vector<16x48xbf16>, vector<8x48xf32> -> vector<8x48xf32>
    %251 = vector.extract_strided_slice %248 {offsets = [0, 0], sizes = [8, 32], strides = [1, 1]} : vector<8x48xf32> to vector<8x32xf32>
    %252 = vector.extract_strided_slice %250 {offsets = [0, 0], sizes = [8, 32], strides = [1, 1]} : vector<8x48xf32> to vector<8x32xf32>
    %253 = arith.addf %251, %252 : vector<8x32xf32>
    %254 = arith.negf %253 : vector<8x32xf32>
    %255 = math.exp %254 : vector<8x32xf32>
    %cst_78 = arith.constant 1.000000e+00 : f32
    %256 = vector.broadcast %cst_78 : f32 to vector<8x32xf32>
    %257 = arith.addf %256, %255 : vector<8x32xf32>
    %258 = arith.divf %256, %257 : vector<8x32xf32>
    %259 = vector.extract_strided_slice %258 {offsets = [0, 0], sizes = [8, 16], strides = [1, 1]} : vector<8x32xf32> to vector<8x16xf32>
    %260 = vector.extract_strided_slice %258 {offsets = [0, 16], sizes = [8, 16], strides = [1, 1]} : vector<8x32xf32> to vector<8x16xf32>
    %261 = vector.extract_strided_slice %248 {offsets = [0, 32], sizes = [8, 16], strides = [1, 1]} : vector<8x48xf32> to vector<8x16xf32>
    %262 = vector.extract_strided_slice %250 {offsets = [0, 32], sizes = [8, 16], strides = [1, 1]} : vector<8x48xf32> to vector<8x16xf32>
    %263 = vector.broadcast %37 : vector<1x16xf32> to vector<8x16xf32>
    %264 = arith.addf %262, %263 : vector<8x16xf32>
    %265 = arith.mulf %259, %264 : vector<8x16xf32>
    %266 = arith.addf %261, %265 : vector<8x16xf32>
    %267 = math.tanh %266 : vector<8x16xf32>
    %cst_79 = arith.constant 1.000000e+00 : f32
    %268 = vector.broadcast %cst_79 : f32 to vector<8x16xf32>
    %269 = arith.subf %268, %260 : vector<8x16xf32>
    %270 = arith.mulf %269, %267 : vector<8x16xf32>
    %271 = arith.mulf %260, %246 : vector<8x16xf32>
    %272 = arith.addf %270, %271 : vector<8x16xf32>
    %c9 = arith.constant 9 : index
    %c0_80 = arith.constant 0 : index
    %c0_81 = arith.constant 0 : index
    %273 = vector.load %arg5[%c9, %c0_80, %c0_81] : memref<13x8x48xf32, #tpu.memory_space<vmem>>, vector<1x8x48xf32>
    %274 = vector.shape_cast %273 : vector<1x8x48xf32> to vector<8x48xf32>
    %275 = arith.truncf %272 : vector<8x16xf32> to vector<8x16xbf16>
    %cst_82 = arith.constant dense<0.000000e+00> : vector<8x48xf32>
    %276 = tpu.matmul %275, %36, %cst_82 {dimension_numbers = #tpu.dot_dimension_numbers<[1], [0], [0], [1], [0, 0, 1, 1], [], []>} : vector<8x16xbf16>, vector<16x48xbf16>, vector<8x48xf32> -> vector<8x48xf32>
    %277 = vector.extract_strided_slice %274 {offsets = [0, 0], sizes = [8, 32], strides = [1, 1]} : vector<8x48xf32> to vector<8x32xf32>
    %278 = vector.extract_strided_slice %276 {offsets = [0, 0], sizes = [8, 32], strides = [1, 1]} : vector<8x48xf32> to vector<8x32xf32>
    %279 = arith.addf %277, %278 : vector<8x32xf32>
    %280 = arith.negf %279 : vector<8x32xf32>
    %281 = math.exp %280 : vector<8x32xf32>
    %cst_83 = arith.constant 1.000000e+00 : f32
    %282 = vector.broadcast %cst_83 : f32 to vector<8x32xf32>
    %283 = arith.addf %282, %281 : vector<8x32xf32>
    %284 = arith.divf %282, %283 : vector<8x32xf32>
    %285 = vector.extract_strided_slice %284 {offsets = [0, 0], sizes = [8, 16], strides = [1, 1]} : vector<8x32xf32> to vector<8x16xf32>
    %286 = vector.extract_strided_slice %284 {offsets = [0, 16], sizes = [8, 16], strides = [1, 1]} : vector<8x32xf32> to vector<8x16xf32>
    %287 = vector.extract_strided_slice %274 {offsets = [0, 32], sizes = [8, 16], strides = [1, 1]} : vector<8x48xf32> to vector<8x16xf32>
    %288 = vector.extract_strided_slice %276 {offsets = [0, 32], sizes = [8, 16], strides = [1, 1]} : vector<8x48xf32> to vector<8x16xf32>
    %289 = vector.broadcast %37 : vector<1x16xf32> to vector<8x16xf32>
    %290 = arith.addf %288, %289 : vector<8x16xf32>
    %291 = arith.mulf %285, %290 : vector<8x16xf32>
    %292 = arith.addf %287, %291 : vector<8x16xf32>
    %293 = math.tanh %292 : vector<8x16xf32>
    %cst_84 = arith.constant 1.000000e+00 : f32
    %294 = vector.broadcast %cst_84 : f32 to vector<8x16xf32>
    %295 = arith.subf %294, %286 : vector<8x16xf32>
    %296 = arith.mulf %295, %293 : vector<8x16xf32>
    %297 = arith.mulf %286, %272 : vector<8x16xf32>
    %298 = arith.addf %296, %297 : vector<8x16xf32>
    %c10 = arith.constant 10 : index
    %c0_85 = arith.constant 0 : index
    %c0_86 = arith.constant 0 : index
    %299 = vector.load %arg5[%c10, %c0_85, %c0_86] : memref<13x8x48xf32, #tpu.memory_space<vmem>>, vector<1x8x48xf32>
    %300 = vector.shape_cast %299 : vector<1x8x48xf32> to vector<8x48xf32>
    %301 = arith.truncf %298 : vector<8x16xf32> to vector<8x16xbf16>
    %cst_87 = arith.constant dense<0.000000e+00> : vector<8x48xf32>
    %302 = tpu.matmul %301, %36, %cst_87 {dimension_numbers = #tpu.dot_dimension_numbers<[1], [0], [0], [1], [0, 0, 1, 1], [], []>} : vector<8x16xbf16>, vector<16x48xbf16>, vector<8x48xf32> -> vector<8x48xf32>
    %303 = vector.extract_strided_slice %300 {offsets = [0, 0], sizes = [8, 32], strides = [1, 1]} : vector<8x48xf32> to vector<8x32xf32>
    %304 = vector.extract_strided_slice %302 {offsets = [0, 0], sizes = [8, 32], strides = [1, 1]} : vector<8x48xf32> to vector<8x32xf32>
    %305 = arith.addf %303, %304 : vector<8x32xf32>
    %306 = arith.negf %305 : vector<8x32xf32>
    %307 = math.exp %306 : vector<8x32xf32>
    %cst_88 = arith.constant 1.000000e+00 : f32
    %308 = vector.broadcast %cst_88 : f32 to vector<8x32xf32>
    %309 = arith.addf %308, %307 : vector<8x32xf32>
    %310 = arith.divf %308, %309 : vector<8x32xf32>
    %311 = vector.extract_strided_slice %310 {offsets = [0, 0], sizes = [8, 16], strides = [1, 1]} : vector<8x32xf32> to vector<8x16xf32>
    %312 = vector.extract_strided_slice %310 {offsets = [0, 16], sizes = [8, 16], strides = [1, 1]} : vector<8x32xf32> to vector<8x16xf32>
    %313 = vector.extract_strided_slice %300 {offsets = [0, 32], sizes = [8, 16], strides = [1, 1]} : vector<8x48xf32> to vector<8x16xf32>
    %314 = vector.extract_strided_slice %302 {offsets = [0, 32], sizes = [8, 16], strides = [1, 1]} : vector<8x48xf32> to vector<8x16xf32>
    %315 = vector.broadcast %37 : vector<1x16xf32> to vector<8x16xf32>
    %316 = arith.addf %314, %315 : vector<8x16xf32>
    %317 = arith.mulf %311, %316 : vector<8x16xf32>
    %318 = arith.addf %313, %317 : vector<8x16xf32>
    %319 = math.tanh %318 : vector<8x16xf32>
    %cst_89 = arith.constant 1.000000e+00 : f32
    %320 = vector.broadcast %cst_89 : f32 to vector<8x16xf32>
    %321 = arith.subf %320, %312 : vector<8x16xf32>
    %322 = arith.mulf %321, %319 : vector<8x16xf32>
    %323 = arith.mulf %312, %298 : vector<8x16xf32>
    %324 = arith.addf %322, %323 : vector<8x16xf32>
    %c11 = arith.constant 11 : index
    %c0_90 = arith.constant 0 : index
    %c0_91 = arith.constant 0 : index
    %325 = vector.load %arg5[%c11, %c0_90, %c0_91] : memref<13x8x48xf32, #tpu.memory_space<vmem>>, vector<1x8x48xf32>
    %326 = vector.shape_cast %325 : vector<1x8x48xf32> to vector<8x48xf32>
    %327 = arith.truncf %324 : vector<8x16xf32> to vector<8x16xbf16>
    %cst_92 = arith.constant dense<0.000000e+00> : vector<8x48xf32>
    %328 = tpu.matmul %327, %36, %cst_92 {dimension_numbers = #tpu.dot_dimension_numbers<[1], [0], [0], [1], [0, 0, 1, 1], [], []>} : vector<8x16xbf16>, vector<16x48xbf16>, vector<8x48xf32> -> vector<8x48xf32>
    %329 = vector.extract_strided_slice %326 {offsets = [0, 0], sizes = [8, 32], strides = [1, 1]} : vector<8x48xf32> to vector<8x32xf32>
    %330 = vector.extract_strided_slice %328 {offsets = [0, 0], sizes = [8, 32], strides = [1, 1]} : vector<8x48xf32> to vector<8x32xf32>
    %331 = arith.addf %329, %330 : vector<8x32xf32>
    %332 = arith.negf %331 : vector<8x32xf32>
    %333 = math.exp %332 : vector<8x32xf32>
    %cst_93 = arith.constant 1.000000e+00 : f32
    %334 = vector.broadcast %cst_93 : f32 to vector<8x32xf32>
    %335 = arith.addf %334, %333 : vector<8x32xf32>
    %336 = arith.divf %334, %335 : vector<8x32xf32>
    %337 = vector.extract_strided_slice %336 {offsets = [0, 0], sizes = [8, 16], strides = [1, 1]} : vector<8x32xf32> to vector<8x16xf32>
    %338 = vector.extract_strided_slice %336 {offsets = [0, 16], sizes = [8, 16], strides = [1, 1]} : vector<8x32xf32> to vector<8x16xf32>
    %339 = vector.extract_strided_slice %326 {offsets = [0, 32], sizes = [8, 16], strides = [1, 1]} : vector<8x48xf32> to vector<8x16xf32>
    %340 = vector.extract_strided_slice %328 {offsets = [0, 32], sizes = [8, 16], strides = [1, 1]} : vector<8x48xf32> to vector<8x16xf32>
    %341 = vector.broadcast %37 : vector<1x16xf32> to vector<8x16xf32>
    %342 = arith.addf %340, %341 : vector<8x16xf32>
    %343 = arith.mulf %337, %342 : vector<8x16xf32>
    %344 = arith.addf %339, %343 : vector<8x16xf32>
    %345 = math.tanh %344 : vector<8x16xf32>
    %cst_94 = arith.constant 1.000000e+00 : f32
    %346 = vector.broadcast %cst_94 : f32 to vector<8x16xf32>
    %347 = arith.subf %346, %338 : vector<8x16xf32>
    %348 = arith.mulf %347, %345 : vector<8x16xf32>
    %349 = arith.mulf %338, %324 : vector<8x16xf32>
    %350 = arith.addf %348, %349 : vector<8x16xf32>
    %c12 = arith.constant 12 : index
    %c0_95 = arith.constant 0 : index
    %c0_96 = arith.constant 0 : index
    %351 = vector.load %arg5[%c12, %c0_95, %c0_96] : memref<13x8x48xf32, #tpu.memory_space<vmem>>, vector<1x8x48xf32>
    %352 = vector.shape_cast %351 : vector<1x8x48xf32> to vector<8x48xf32>
    %353 = arith.truncf %350 : vector<8x16xf32> to vector<8x16xbf16>
    %cst_97 = arith.constant dense<0.000000e+00> : vector<8x48xf32>
    %354 = tpu.matmul %353, %36, %cst_97 {dimension_numbers = #tpu.dot_dimension_numbers<[1], [0], [0], [1], [0, 0, 1, 1], [], []>} : vector<8x16xbf16>, vector<16x48xbf16>, vector<8x48xf32> -> vector<8x48xf32>
    %355 = vector.extract_strided_slice %352 {offsets = [0, 0], sizes = [8, 32], strides = [1, 1]} : vector<8x48xf32> to vector<8x32xf32>
    %356 = vector.extract_strided_slice %354 {offsets = [0, 0], sizes = [8, 32], strides = [1, 1]} : vector<8x48xf32> to vector<8x32xf32>
    %357 = arith.addf %355, %356 : vector<8x32xf32>
    %358 = arith.negf %357 : vector<8x32xf32>
    %359 = math.exp %358 : vector<8x32xf32>
    %cst_98 = arith.constant 1.000000e+00 : f32
    %360 = vector.broadcast %cst_98 : f32 to vector<8x32xf32>
    %361 = arith.addf %360, %359 : vector<8x32xf32>
    %362 = arith.divf %360, %361 : vector<8x32xf32>
    %363 = vector.extract_strided_slice %362 {offsets = [0, 0], sizes = [8, 16], strides = [1, 1]} : vector<8x32xf32> to vector<8x16xf32>
    %364 = vector.extract_strided_slice %362 {offsets = [0, 16], sizes = [8, 16], strides = [1, 1]} : vector<8x32xf32> to vector<8x16xf32>
    %365 = vector.extract_strided_slice %352 {offsets = [0, 32], sizes = [8, 16], strides = [1, 1]} : vector<8x48xf32> to vector<8x16xf32>
    %366 = vector.extract_strided_slice %354 {offsets = [0, 32], sizes = [8, 16], strides = [1, 1]} : vector<8x48xf32> to vector<8x16xf32>
    %367 = vector.broadcast %37 : vector<1x16xf32> to vector<8x16xf32>
    %368 = arith.addf %366, %367 : vector<8x16xf32>
    %369 = arith.mulf %363, %368 : vector<8x16xf32>
    %370 = arith.addf %365, %369 : vector<8x16xf32>
    %371 = math.tanh %370 : vector<8x16xf32>
    %cst_99 = arith.constant 1.000000e+00 : f32
    %372 = vector.broadcast %cst_99 : f32 to vector<8x16xf32>
    %373 = arith.subf %372, %364 : vector<8x16xf32>
    %374 = arith.mulf %373, %371 : vector<8x16xf32>
    %375 = arith.mulf %364, %350 : vector<8x16xf32>
    %376 = arith.addf %374, %375 : vector<8x16xf32>
    %c80 = arith.constant 80 : index
    %c0_100 = arith.constant 0 : index
    %377 = vector.load %arg1[%c80, %c0_100] : memref<144x48xbf16, #tpu.memory_space<vmem>>, vector<4x12xbf16>
    %c4_101 = arith.constant 4 : index
    %c0_102 = arith.constant 0 : index
    %378 = vector.load %arg2[%c4_101, %c0_102] : memref<8x48xf32, #tpu.memory_space<vmem>>, vector<1x4xf32>
    %cst_103 = arith.constant 0.000000e+00 : f32
    %379 = vector.broadcast %cst_103 : f32 to vector<32x4xf32>
    %c0_104 = arith.constant 0 : index
    %c0_105 = arith.constant 0 : index
    %c0_106 = arith.constant 0 : index
    %380 = vector.load %arg6[%c0_104, %c0_105, %c0_106] : memref<3x32x12xf32, #tpu.memory_space<vmem>>, vector<1x32x12xf32>
    %381 = vector.shape_cast %380 : vector<1x32x12xf32> to vector<32x12xf32>
    %382 = arith.truncf %379 : vector<32x4xf32> to vector<32x4xbf16>
    %cst_107 = arith.constant dense<0.000000e+00> : vector<32x12xf32>
    %383 = tpu.matmul %382, %377, %cst_107 {dimension_numbers = #tpu.dot_dimension_numbers<[1], [0], [0], [1], [0, 0, 1, 1], [], []>} : vector<32x4xbf16>, vector<4x12xbf16>, vector<32x12xf32> -> vector<32x12xf32>
    %384 = vector.extract_strided_slice %381 {offsets = [0, 0], sizes = [32, 8], strides = [1, 1]} : vector<32x12xf32> to vector<32x8xf32>
    %385 = vector.extract_strided_slice %383 {offsets = [0, 0], sizes = [32, 8], strides = [1, 1]} : vector<32x12xf32> to vector<32x8xf32>
    %386 = arith.addf %384, %385 : vector<32x8xf32>
    %387 = arith.negf %386 : vector<32x8xf32>
    %388 = math.exp %387 : vector<32x8xf32>
    %cst_108 = arith.constant 1.000000e+00 : f32
    %389 = vector.broadcast %cst_108 : f32 to vector<32x8xf32>
    %390 = arith.addf %389, %388 : vector<32x8xf32>
    %391 = arith.divf %389, %390 : vector<32x8xf32>
    %392 = vector.extract_strided_slice %391 {offsets = [0, 0], sizes = [32, 4], strides = [1, 1]} : vector<32x8xf32> to vector<32x4xf32>
    %393 = vector.extract_strided_slice %391 {offsets = [0, 4], sizes = [32, 4], strides = [1, 1]} : vector<32x8xf32> to vector<32x4xf32>
    %394 = vector.extract_strided_slice %381 {offsets = [0, 8], sizes = [32, 4], strides = [1, 1]} : vector<32x12xf32> to vector<32x4xf32>
    %395 = vector.extract_strided_slice %383 {offsets = [0, 8], sizes = [32, 4], strides = [1, 1]} : vector<32x12xf32> to vector<32x4xf32>
    %396 = vector.broadcast %378 : vector<1x4xf32> to vector<32x4xf32>
    %397 = arith.addf %395, %396 : vector<32x4xf32>
    %398 = arith.mulf %392, %397 : vector<32x4xf32>
    %399 = arith.addf %394, %398 : vector<32x4xf32>
    %400 = math.tanh %399 : vector<32x4xf32>
    %cst_109 = arith.constant 1.000000e+00 : f32
    %401 = vector.broadcast %cst_109 : f32 to vector<32x4xf32>
    %402 = arith.subf %401, %393 : vector<32x4xf32>
    %403 = arith.mulf %402, %400 : vector<32x4xf32>
    %404 = arith.mulf %393, %379 : vector<32x4xf32>
    %405 = arith.addf %403, %404 : vector<32x4xf32>
    %c1_110 = arith.constant 1 : index
    %c0_111 = arith.constant 0 : index
    %c0_112 = arith.constant 0 : index
    %406 = vector.load %arg6[%c1_110, %c0_111, %c0_112] : memref<3x32x12xf32, #tpu.memory_space<vmem>>, vector<1x32x12xf32>
    %407 = vector.shape_cast %406 : vector<1x32x12xf32> to vector<32x12xf32>
    %408 = arith.truncf %405 : vector<32x4xf32> to vector<32x4xbf16>
    %cst_113 = arith.constant dense<0.000000e+00> : vector<32x12xf32>
    %409 = tpu.matmul %408, %377, %cst_113 {dimension_numbers = #tpu.dot_dimension_numbers<[1], [0], [0], [1], [0, 0, 1, 1], [], []>} : vector<32x4xbf16>, vector<4x12xbf16>, vector<32x12xf32> -> vector<32x12xf32>
    %410 = vector.extract_strided_slice %407 {offsets = [0, 0], sizes = [32, 8], strides = [1, 1]} : vector<32x12xf32> to vector<32x8xf32>
    %411 = vector.extract_strided_slice %409 {offsets = [0, 0], sizes = [32, 8], strides = [1, 1]} : vector<32x12xf32> to vector<32x8xf32>
    %412 = arith.addf %410, %411 : vector<32x8xf32>
    %413 = arith.negf %412 : vector<32x8xf32>
    %414 = math.exp %413 : vector<32x8xf32>
    %cst_114 = arith.constant 1.000000e+00 : f32
    %415 = vector.broadcast %cst_114 : f32 to vector<32x8xf32>
    %416 = arith.addf %415, %414 : vector<32x8xf32>
    %417 = arith.divf %415, %416 : vector<32x8xf32>
    %418 = vector.extract_strided_slice %417 {offsets = [0, 0], sizes = [32, 4], strides = [1, 1]} : vector<32x8xf32> to vector<32x4xf32>
    %419 = vector.extract_strided_slice %417 {offsets = [0, 4], sizes = [32, 4], strides = [1, 1]} : vector<32x8xf32> to vector<32x4xf32>
    %420 = vector.extract_strided_slice %407 {offsets = [0, 8], sizes = [32, 4], strides = [1, 1]} : vector<32x12xf32> to vector<32x4xf32>
    %421 = vector.extract_strided_slice %409 {offsets = [0, 8], sizes = [32, 4], strides = [1, 1]} : vector<32x12xf32> to vector<32x4xf32>
    %422 = vector.broadcast %378 : vector<1x4xf32> to vector<32x4xf32>
    %423 = arith.addf %421, %422 : vector<32x4xf32>
    %424 = arith.mulf %418, %423 : vector<32x4xf32>
    %425 = arith.addf %420, %424 : vector<32x4xf32>
    %426 = math.tanh %425 : vector<32x4xf32>
    %cst_115 = arith.constant 1.000000e+00 : f32
    %427 = vector.broadcast %cst_115 : f32 to vector<32x4xf32>
    %428 = arith.subf %427, %419 : vector<32x4xf32>
    %429 = arith.mulf %428, %426 : vector<32x4xf32>
    %430 = arith.mulf %419, %405 : vector<32x4xf32>
    %431 = arith.addf %429, %430 : vector<32x4xf32>
    %c2_116 = arith.constant 2 : index
    %c0_117 = arith.constant 0 : index
    %c0_118 = arith.constant 0 : index
    %432 = vector.load %arg6[%c2_116, %c0_117, %c0_118] : memref<3x32x12xf32, #tpu.memory_space<vmem>>, vector<1x32x12xf32>
    %433 = vector.shape_cast %432 : vector<1x32x12xf32> to vector<32x12xf32>
    %434 = arith.truncf %431 : vector<32x4xf32> to vector<32x4xbf16>
    %cst_119 = arith.constant dense<0.000000e+00> : vector<32x12xf32>
    %435 = tpu.matmul %434, %377, %cst_119 {dimension_numbers = #tpu.dot_dimension_numbers<[1], [0], [0], [1], [0, 0, 1, 1], [], []>} : vector<32x4xbf16>, vector<4x12xbf16>, vector<32x12xf32> -> vector<32x12xf32>
    %436 = vector.extract_strided_slice %433 {offsets = [0, 0], sizes = [32, 8], strides = [1, 1]} : vector<32x12xf32> to vector<32x8xf32>
    %437 = vector.extract_strided_slice %435 {offsets = [0, 0], sizes = [32, 8], strides = [1, 1]} : vector<32x12xf32> to vector<32x8xf32>
    %438 = arith.addf %436, %437 : vector<32x8xf32>
    %439 = arith.negf %438 : vector<32x8xf32>
    %440 = math.exp %439 : vector<32x8xf32>
    %cst_120 = arith.constant 1.000000e+00 : f32
    %441 = vector.broadcast %cst_120 : f32 to vector<32x8xf32>
    %442 = arith.addf %441, %440 : vector<32x8xf32>
    %443 = arith.divf %441, %442 : vector<32x8xf32>
    %444 = vector.extract_strided_slice %443 {offsets = [0, 0], sizes = [32, 4], strides = [1, 1]} : vector<32x8xf32> to vector<32x4xf32>
    %445 = vector.extract_strided_slice %443 {offsets = [0, 4], sizes = [32, 4], strides = [1, 1]} : vector<32x8xf32> to vector<32x4xf32>
    %446 = vector.extract_strided_slice %433 {offsets = [0, 8], sizes = [32, 4], strides = [1, 1]} : vector<32x12xf32> to vector<32x4xf32>
    %447 = vector.extract_strided_slice %435 {offsets = [0, 8], sizes = [32, 4], strides = [1, 1]} : vector<32x12xf32> to vector<32x4xf32>
    %448 = vector.broadcast %378 : vector<1x4xf32> to vector<32x4xf32>
    %449 = arith.addf %447, %448 : vector<32x4xf32>
    %450 = arith.mulf %444, %449 : vector<32x4xf32>
    %451 = arith.addf %446, %450 : vector<32x4xf32>
    %452 = math.tanh %451 : vector<32x4xf32>
    %cst_121 = arith.constant 1.000000e+00 : f32
    %453 = vector.broadcast %cst_121 : f32 to vector<32x4xf32>
    %454 = arith.subf %453, %445 : vector<32x4xf32>
    %455 = arith.mulf %454, %452 : vector<32x4xf32>
    %456 = arith.mulf %445, %431 : vector<32x4xf32>
    %457 = arith.addf %455, %456 : vector<32x4xf32>
    %458 = vector.shape_cast %457 : vector<32x4xf32> to vector<4x8x4xf32>
    %459 = vector.extract_strided_slice %458 {offsets = [0, 0, 0], sizes = [1, 8, 4], strides = [1, 1, 1]} : vector<4x8x4xf32> to vector<1x8x4xf32>
    %460 = vector.shape_cast %459 : vector<1x8x4xf32> to vector<8x4xf32>
    %461 = vector.extract_strided_slice %458 {offsets = [1, 0, 0], sizes = [1, 8, 4], strides = [1, 1, 1]} : vector<4x8x4xf32> to vector<1x8x4xf32>
    %462 = vector.shape_cast %461 : vector<1x8x4xf32> to vector<8x4xf32>
    %463 = vector.extract_strided_slice %458 {offsets = [2, 0, 0], sizes = [1, 8, 4], strides = [1, 1, 1]} : vector<4x8x4xf32> to vector<1x8x4xf32>
    %464 = vector.shape_cast %463 : vector<1x8x4xf32> to vector<8x4xf32>
    %465 = vector.extract_strided_slice %458 {offsets = [3, 0, 0], sizes = [1, 8, 4], strides = [1, 1, 1]} : vector<4x8x4xf32> to vector<1x8x4xf32>
    %466 = vector.shape_cast %465 : vector<1x8x4xf32> to vector<8x4xf32>
    %467 = tpu.concatenate %376, %460, %462, %464, %466 in 1 : vector<8x16xf32>, vector<8x4xf32>, vector<8x4xf32>, vector<8x4xf32>, vector<8x4xf32> -> vector<8x32xf32>
    %c96 = arith.constant 96 : index
    %c0_122 = arith.constant 0 : index
    %468 = vector.load %arg1[%c96, %c0_122] : memref<144x48xbf16, #tpu.memory_space<vmem>>, vector<32x8xbf16>
    %469 = arith.truncf %467 : vector<8x32xf32> to vector<8x32xbf16>
    %cst_123 = arith.constant dense<0.000000e+00> : vector<8x8xf32>
    %470 = tpu.matmul %469, %468, %cst_123 {dimension_numbers = #tpu.dot_dimension_numbers<[1], [0], [0], [1], [0, 0, 1, 1], [], []>} : vector<8x32xbf16>, vector<32x8xbf16>, vector<8x8xf32> -> vector<8x8xf32>
    %c5_124 = arith.constant 5 : index
    %c0_125 = arith.constant 0 : index
    %471 = vector.load %arg2[%c5_124, %c0_125] : memref<8x48xf32, #tpu.memory_space<vmem>>, vector<1x8xf32>
    %472 = vector.broadcast %471 : vector<1x8xf32> to vector<8x8xf32>
    %473 = arith.addf %470, %472 : vector<8x8xf32>
    %c0_126 = arith.constant 0 : index
    %474 = memref.load %arg3[%c0_126] : memref<4xf32, #tpu.memory_space<smem>>
    %c1_127 = arith.constant 1 : index
    %475 = memref.load %arg3[%c1_127] : memref<4xf32, #tpu.memory_space<smem>>
    %c2_128 = arith.constant 2 : index
    %476 = memref.load %arg3[%c2_128] : memref<4xf32, #tpu.memory_space<smem>>
    %c3_129 = arith.constant 3 : index
    %477 = memref.load %arg3[%c3_129] : memref<4xf32, #tpu.memory_space<smem>>
    %c12_130 = arith.constant 12 : index
    %c0_131 = arith.constant 0 : index
    %c0_132 = arith.constant 0 : index
    %478 = vector.load %arg0[%c12_130, %c0_131, %c0_132] : memref<16x8x8xf32, #tpu.memory_space<vmem>>, vector<1x8x8xf32>
    %479 = vector.shape_cast %478 : vector<1x8x8xf32> to vector<8x8xf32>
    %480 = vector.broadcast %474 : f32 to vector<8x8xf32>
    %481 = arith.mulf %479, %480 : vector<8x8xf32>
    %482 = arith.addf %473, %481 : vector<8x8xf32>
    %c13 = arith.constant 13 : index
    %c0_133 = arith.constant 0 : index
    %c0_134 = arith.constant 0 : index
    %483 = vector.load %arg0[%c13, %c0_133, %c0_134] : memref<16x8x8xf32, #tpu.memory_space<vmem>>, vector<1x8x8xf32>
    %484 = vector.shape_cast %483 : vector<1x8x8xf32> to vector<8x8xf32>
    %485 = vector.broadcast %475 : f32 to vector<8x8xf32>
    %486 = arith.mulf %484, %485 : vector<8x8xf32>
    %487 = arith.addf %482, %486 : vector<8x8xf32>
    %c14 = arith.constant 14 : index
    %c0_135 = arith.constant 0 : index
    %c0_136 = arith.constant 0 : index
    %488 = vector.load %arg0[%c14, %c0_135, %c0_136] : memref<16x8x8xf32, #tpu.memory_space<vmem>>, vector<1x8x8xf32>
    %489 = vector.shape_cast %488 : vector<1x8x8xf32> to vector<8x8xf32>
    %490 = vector.broadcast %476 : f32 to vector<8x8xf32>
    %491 = arith.mulf %489, %490 : vector<8x8xf32>
    %492 = arith.addf %487, %491 : vector<8x8xf32>
    %c15 = arith.constant 15 : index
    %c0_137 = arith.constant 0 : index
    %c0_138 = arith.constant 0 : index
    %493 = vector.load %arg0[%c15, %c0_137, %c0_138] : memref<16x8x8xf32, #tpu.memory_space<vmem>>, vector<1x8x8xf32>
    %494 = vector.shape_cast %493 : vector<1x8x8xf32> to vector<8x8xf32>
    %495 = vector.broadcast %477 : f32 to vector<8x8xf32>
    %496 = arith.mulf %494, %495 : vector<8x8xf32>
    %497 = arith.addf %492, %496 : vector<8x8xf32>
    %c128 = arith.constant 128 : index
    %c0_139 = arith.constant 0 : index
    %498 = vector.load %arg1[%c128, %c0_139] : memref<144x48xbf16, #tpu.memory_space<vmem>>, vector<8x1xbf16>
    %499 = arith.truncf %497 : vector<8x8xf32> to vector<8x8xbf16>
    %cst_140 = arith.constant dense<0.000000e+00> : vector<8x1xf32>
    %500 = tpu.matmul %499, %498, %cst_140 {dimension_numbers = #tpu.dot_dimension_numbers<[1], [0], [0], [1], [0, 0, 1, 1], [], []>} : vector<8x8xbf16>, vector<8x1xbf16>, vector<8x1xf32> -> vector<8x1xf32>
    %c6_141 = arith.constant 6 : index
    %c0_142 = arith.constant 0 : index
    %501 = vector.load %arg2[%c6_141, %c0_142] : memref<8x48xf32, #tpu.memory_space<vmem>>, vector<1x1xf32>
    %502 = vector.broadcast %501 : vector<1x1xf32> to vector<8x1xf32>
    %503 = arith.addf %500, %502 : vector<8x1xf32>
    %cst_143 = arith.constant 0.000000e+00 : f32
    %504 = vector.broadcast %cst_143 : f32 to vector<8x1xf32>
    %505 = arith.maximumf %503, %504 : vector<8x1xf32>
    %c0_144 = arith.constant 0 : index
    %c0_145 = arith.constant 0 : index
    %506 = vector.load %arg4[%c0_144, %c0_145] : memref<8x1xf32, #tpu.memory_space<vmem>>, vector<8x1xf32>
    tpu.vector_store %arg4[%c0_144, %c0_145], %505 {strides = array<i32>} : memref<8x1xf32, #tpu.memory_space<vmem>>, vector<8x1xf32>,
    return
  }
}

</mosaic_0001>

<bundles_post_ra>
// kernel: lstnet_pallas.1
= control target key start
LH: loop header
LB: loop body
LE: loop exit
PB: predicated region body
PF: predicated region fallthrough
CT: control target
= control target key end

     0   :  { %9 = vsyncpa [#allocation5], 0  ;;  %s3527_s0 = inlined_call_operand.vmem [shape: f32[16,8,8], index: 0, kind: input, shape index: {}]   ;;  %s3528_s1 = inlined_call_operand.vmem [shape: bf16[144,48], index: 1, kind: input, shape index: {}]   ;;  %s3529_s2 = inlined_call_operand.vmem [shape: f32[8,48], index: 2, kind: input, shape index: {}]   ;;  %s3530_s3 = inlined_call_operand.vmem [shape: f32[4], index: 3, kind: input, shape index: {}]   ;;  %s3531_s4 = inlined_call_operand.vmem [shape: f32[8,1], index: 4, kind: output, shape index: {}]  }
   0x1   :  { %s22_s17 = sshll.u32 %s3530_s3, 4  ;;  %s23_s17 = int_to_ptr.vmem [resolvable:$true] %s22_s17 }
   0x2   :  { %s2883_s18 = scalar_lea.vmem %s23_s17, 16  ;;  %p2888_p1 = scmp.lt.s32.totalorder %s23_s17, %s23_s17 }
   0x3   :  { %p2884_p0 = scmp.ne.s32.totalorder %s23_s17, %s2883_s18  ;;  %p2889_p2 = scmp.lt.s32.totalorder %s2883_s18, %s2883_s18 }
   0x5   :  { %p2890_p3 = por %p2889_p2, %p2888_p1 }
   0x7   :  { %p2891_p4 = pnand %p2890_p3, %p2884_p0 }
   0x9   :  { %2894 = shalt.err (!%p2891_p4)
}
   0xa   :  { %s2897_s19 = smov [#allocation4]  }
   0xb   :  { %25 = dma.vmem_to_smem %s23_s17, 16, %s2897_s19, [#allocation5]  }
   0xc   :  { %2895 = dma.done.wait [#allocation5], 16  }
   0xd   :  { %2896 = vsyncadd [#allocation5], 4294967280 }
   0xe   :  { %29 = sfence }
   0xf   :  { %v2942_v0 = vld [vmem:[%s3527_s0 + $0x8] sm:$0xff]  ;;  %v2322_v1 = vld [vmem:[%s3527_s0 + $0x10] sm:$0xff]  ;;  %v2335_v2 = vld [vmem:[%s3527_s0 + $0x18] sm:$0xff]  ;;  %v2898_v5 = vmov 0.0   ;;  %s2899_s27 = smov 8   ;;  %s2900_s28 = smov 24  }
  0x10   :  { %v65_v3 = vpack.c.bf16 %v2322_v1, %v2942_v0  ;;  %v2348_v4 = vld [vmem:[%s3527_s0 + $0x20] sm:$0xff]  ;;  %2508 = vmatprep.subr.bf16.mxu0 %v2898_v5  ;;  %2540 = vmatprep.subr.bf16.mxu1 %v2898_v5  ;;  %v2957_v7 = vpack.c.bf16 %v2335_v2, %v2322_v1  ;;  %v2337_v8 = vld [vmem:[%s3527_s0 + $0x28] sm:$0xff]  ;;  %v2350_v9 = vld [vmem:[%s3527_s0 + $0x30] sm:$0xff]  ;;  %vm2901_vm0 = vmmov 0   ;;  %s2902_s9 = smov 16   ;;  %vm177_vm1 = vcmask 64512  }
  0x11   :  { %v107_v6 = vpack.c.bf16 %v2348_v4, %v2335_v2  ;;  %2512 = vmatprep.mubr.msk.bf16.mxu0 %vm2901_vm0, %v2898_v5  ;;  %v2727_v10 = vld [vmem:[%s3528_s1] sm:$0xff]   ;;  %2542 = vmatprep.mubr.msk.bf16.mxu1 %vm2901_vm0, %v2898_v5  ;;  %v2975_v11 = vpack.c.bf16 %v2337_v8, %v2348_v4  ;;  %v2728_v12 = vld [vmem:[%s3528_s1 + $0x8] sm:$0xff]   ;;  %v108_v13 = vpack.c.bf16 %v2350_v9, %v2337_v8  ;;  %v2339_v14 = vld [vmem:[%s3527_s0 + $0x38] sm:$0xff]  ;;  %vm199_vm2 = vcmask 130048   ;;  %s2904_s14 = smov 32   ;;  %s2905_s19 = smov 96  }
  0x12   :  { %121 = vrot.lane.b32.xlu0 %v65_v3, %s2899_s27  ;;  %2509 = vmatpush3.bf16.msra.mxu0 %v2727_v10  ;;  %v2988_v15 = vpack.c.bf16 %v2339_v14, %v2350_v9  ;;  %v2352_v16 = vld [vmem:[%s3527_s0 + $0x40] sm:$0xff]  ;;  %v2341_v18 = vld [vmem:[%s3527_s0 + $0x48] sm:$0xff]  ;;  %v2354_v19 = vld [vmem:[%s3527_s0 + $0x50] sm:$0xff]  ;;  %vm214_vm3 = vcmask 195584   ;;  %vm250_vm4 = vcmask 261120   ;;  %vm400_vm5 = vcmask 1043456  }
  0x13   :  { %163 = vrot.lane.b32.xlu1 %v107_v6, %s2900_s28  ;;  %2510 = vmatprep.subr.bf16.mxu0 %v2898_v5  ;;  %v109_v17 = vpack.c.bf16 %v2352_v16, %v2339_v14  ;;  %v3004_v20 = vpack.c.bf16 %v2341_v18, %v2352_v16  ;;  %v110_v21 = vpack.c.bf16 %v2354_v19, %v2341_v18  ;;  %v2343_v22 = vld [vmem:[%s3527_s0 + $0x58] sm:$0xff]  ;;  %v3018_v24 = vld [vmem:[%s3527_s0 + $0x60] sm:$0xff]  ;;  %v2345_v26 = vld [vmem:[%s3527_s0 + $0x68] sm:$0xff]  ;;  %vm492_vm6 = vcmask 392192   ;;  %s2906_s23 = smov 112   ;;  %s2907_s6 = smov 120  }
  0x14   :  { %v3013_v23 = vpack.c.bf16 %v2343_v22, %v2354_v19  ;;  %v111_v25 = vpack.c.bf16 %v3018_v24, %v2343_v22  ;;  %v2358_v27 = vld [vmem:[%s3527_s0 + $0x70] sm:$0xff]  ;;  %v91_v28 = vpack.c.bf16 %v2345_v26, %v3018_v24  ;;  %v71_v30 = vpack.c.bf16 %v2345_v26, %v2345_v26  ;;  %v2359_v32 = vld [vmem:[%s3527_s0 + $0x78] sm:$0xff]  ;;  %v31_v34 = vld [vmem:[%s3527_s0] sm:$0xff]  ;;  %s2908_s7 = smov 124   ;;  %s2909_s12 = smov 12  }
  0x15   :  { %v112_v29 = vpack.c.bf16 %v2358_v27, %v2345_v26  ;;  %v92_v31 = vpack.c.bf16 %v2358_v27, %v2358_v27  ;;  %v113_v33 = vpack.c.bf16 %v2359_v32, %v2359_v32  ;;  %v44_v36 = vpack.c.bf16 %v2942_v0, %v31_v34  ;;  %v3049_v40 = vld [vmem:[%s3528_s1 + $0x18] sm:$0xff]   ;;  %v373_v18 = vld [vmem:[%s3528_s1 + $0x10] sm:$0xf]  ;;  %s2910_s13 = smov 20   ;;  %s2434_s15 = sld [smem:[#allocation4 + $0x1]] }
  0x16   :  { %142 = vrot.lane.b32.xlu0 %v2957_v7, %s2902_s9  ;;  %2511 = vmatpush3.bf16.msra.mxu0 %v2728_v12  ;;  %v50_v9 = vpack.c.bf16 %v3018_v24, %v3018_v24  ;;  %v402_v19 = vsel %vm400_vm5, %v373_v18, 0  ;;  %vm602_vm7 = vcmask 97280   ;;  %vm1624_vm8 = vcmask 1041408   ;;  %s2435_s16 = sld [smem:[#allocation4 + $0x2]]  ;;  %s2436_s17 = sld [smem:[#allocation4 + $0x3]] }
  0x17   :  { %123 = vrot.lane.b32.xlu1 %v107_v6, %s2899_s27  ;;  %2600 = vmatprep.subr.bf16.mxu0 %v2898_v5  ;;  %vm1621_vm9 = vcmask 31744   ;;  %vm2166_vm10 = vcmask 162816   ;;  %vm2169_vm11 = vcmask 228352   ;;  %vm2314_vm12 = vcmask 7168  }
  0x18   :  { %2541 = vmatpush3.bf16.msra.mxu1 %v402_v19 }
  0x19   :  { %2570 = vmatprep.subr.bf16.mxu1 %v2898_v5 }
  0x1a   :  { %144 = vrot.lane.b32.xlu0 %v2975_v11, %s2902_s9 }
  0x1b   :  { %165 = vrot.lane.b32.xlu1 %v108_v13, %s2900_s28 }
  0x1e   :  { %125 = vrot.lane.b32.xlu0 %v108_v13, %s2899_s27 }
  0x1f   :  { %146 = vrot.lane.b32.xlu1 %v2988_v15, %s2902_s9 }
  0x22   :  { %167 = vrot.lane.b32.xlu0 %v109_v17, %s2900_s28 }
  0x23   :  { %127 = vrot.lane.b32.xlu1 %v109_v17, %s2899_s27  ;;  %v2903_v17 = vmov 0  }
  0x26   :  { %148 = vrot.lane.b32.xlu0 %v3004_v20, %s2902_s9 }
  0x27   :  { %169 = vrot.lane.b32.xlu1 %v110_v21, %s2900_s28 }
  0x2a   :  { %129 = vrot.lane.b32.xlu0 %v110_v21, %s2899_s27  ;;  %v3118_v21 = vld [vmem:[%s3529_s2] ss:$0 sm:$0xff] }
  0x2b   :  { %150 = vrot.lane.b32.xlu1 %v3013_v23, %s2902_s9 }
  0x2e   :  { %171 = vrot.lane.b32.xlu0 %v111_v25, %s2900_s28 }
  0x2f   :  { %131 = vrot.lane.b32.xlu1 %v111_v25, %s2899_s27 }
  0x32   :  { %152 = vrot.lane.b32.xlu0 %v91_v28, %s2902_s9  ;;  %v506_v28 = vld [vmem:[%s3528_s1 + $0x20] sm:$0xf] }
  0x33   :  { %173 = vrot.lane.b32.xlu1 %v112_v29, %s2900_s28  ;;  %v513_v32 = vsel %vm400_vm5, %v506_v28, 0 }
  0x36   :  { %133 = vrot.lane.b32.xlu0 %v71_v30, %s2899_s27 }
  0x37   :  { %154 = vrot.lane.b32.xlu1 %v92_v31, %s2902_s9 }
  0x3a   :  { %175 = vrot.lane.b32.xlu0 %v113_v33, %s2900_s28 }
  0x84   :  { %v122_v35 = vpop.permute.xlu0 %121 }
  0x85   :  { %v164_v37 = vpop.permute.xlu1 %163  ;;  %v180_v38 = vsel %vm177_vm1, %v44_v36, %v122_v35 }
  0x88   :  { %v143_v39 = vpop.permute.xlu0 %142 }
  0x89   :  { %v201_v41 = vsel %vm199_vm2, %v180_v38, %v143_v39  ;;  %v124_v42 = vpop.permute.xlu1 %123 }
  0x8a   :  { %v216_v43 = vsel %vm214_vm3, %v201_v41, %v164_v37  ;;  %v183_v44 = vsel %vm177_vm1, %v2957_v7, %v124_v42 }
  0x8b   :  { %2513 = vmatmul.mubr.msk.bf16.vlgmr.msra.gmra.mrb[0].mxu0 %vm250_vm4, %v216_v43 }
  0x8c   :  { %v145_v45 = vpop.permute.xlu0 %144  ;;  %2516 = vmatprep.mubr.msk.bf16.mxu0 %vm2901_vm0, %v2898_v5  ;;  %2601 = vmatpush3.bf16.msra.mxu0 %v3049_v40 }
  0x8d   :  { %v203_v46 = vsel %vm199_vm2, %v183_v44, %v145_v45  ;;  %v166_v47 = vpop.permute.xlu1 %165  ;;  %2606 = vmatprep.subr.bf16.mxu0 %v2898_v5 }
  0x8e   :  { %v218_v48 = vsel %vm214_vm3, %v203_v46, %v166_v47 }
  0x90   :  { %v126_v49 = vpop.permute.xlu0 %125 }
  0x91   :  { %v147_v50 = vpop.permute.xlu1 %146  ;;  %v186_v51 = vsel %vm177_vm1, %v2975_v11, %v126_v49 }
  0x92   :  { %v205_v52 = vsel %vm199_vm2, %v186_v51, %v147_v50 }
  0x93   :  { %2517 = vmatmul.mubr.msk.bf16.gmra.mrb[4].mxu0 %vm250_vm4, %v218_v48 }
  0x94   :  { %2520 = vmatprep.mubr.msk.bf16.mxu0 %vm2901_vm0, %v2898_v5  ;;  %v168_v53 = vpop.permute.xlu0 %167 }
  0x95   :  { %v128_v54 = vpop.permute.xlu1 %127  ;;  %v220_v55 = vsel %vm214_vm3, %v205_v52, %v168_v53 }
  0x96   :  { %v189_v57 = vsel %vm177_vm1, %v2988_v15, %v128_v54 }
  0x98   :  { %v149_v56 = vpop.permute.xlu0 %148 }
  0x99   :  { %v207_v58 = vsel %vm199_vm2, %v189_v57, %v149_v56  ;;  %v170_v59 = vpop.permute.xlu1 %169 }
  0x9a   :  { %v222_v61 = vsel %vm214_vm3, %v207_v58, %v170_v59 }
  0x9b   :  { %2521 = vmatmul.mubr.msk.bf16.gmra.mrb[8].mxu0 %vm250_vm4, %v220_v55 }
  0x9c   :  { %2524 = vmatprep.mubr.msk.bf16.mxu0 %vm2901_vm0, %v2898_v5  ;;  %v130_v60 = vpop.permute.xlu0 %129 }
  0x9d   :  { %v151_v62 = vpop.permute.xlu1 %150  ;;  %v192_v63 = vsel %vm177_vm1, %v3004_v20, %v130_v60  ;;  %v2388_v20 = vld [vmem:[%s3529_s2 + $0x2] ss:$0 sm:$0xff] }
  0x9e   :  { %v209_v0 = vsel %vm199_vm2, %v192_v63, %v151_v62  ;;  %680 = vrot.lane.b32.xlu1 %v2388_v20, %s2904_s14 }
  0xa0   :  { %v172_v1 = vpop.permute.xlu0 %171 }
  0xa1   :  { %v132_v2 = vpop.permute.xlu1 %131  ;;  %v224_v3 = vsel %vm214_vm3, %v209_v0, %v172_v1 }
  0xa2   :  { %v195_v4 = vsel %vm177_vm1, %v3013_v23, %v132_v2 }
  0xa3   :  { %2525 = vmatmul.mubr.msk.bf16.gmra.mrb[12].mxu0 %vm250_vm4, %v222_v61 }
  0xa4   :  { %2528 = vmatprep.mubr.msk.bf16.mxu0 %vm2901_vm0, %v2898_v5  ;;  %v153_v6 = vpop.permute.xlu0 %152 }
  0xa5   :  { %v211_v7 = vsel %vm199_vm2, %v195_v4, %v153_v6  ;;  %v174_v8 = vpop.permute.xlu1 %173 }
  0xa6   :  { %v226_v11 = vsel %vm214_vm3, %v211_v7, %v174_v8 }
  0xa8   :  { %v134_v10 = vpop.permute.xlu0 %133 }
  0xa9   :  { %v198_v12 = vsel %vm177_vm1, %v50_v9, %v134_v10  ;;  %v155_v13 = vpop.permute.xlu1 %154 }
  0xaa   :  { %v213_v14 = vsel %vm199_vm2, %v198_v12, %v155_v13 }
  0xab   :  { %2529 = vmatmul.mubr.msk.bf16.gmra.mrb[16].mxu0 %vm250_vm4, %v224_v3 }
  0xac   :  { %2532 = vmatprep.mubr.msk.bf16.mxu0 %vm2901_vm0, %v2898_v5  ;;  %v176_v15 = vpop.permute.xlu0 %175 }
  0xad   :  { %v228_v16 = vsel %vm214_vm3, %v213_v14, %v176_v15 }
  0xb3   :  { %2533 = vmatmul.mubr.msk.bf16.gmra.mrb[20].mxu0 %vm250_vm4, %v226_v11 }
  0xb4   :  { %2536 = vmatprep.mubr.msk.bf16.mxu0 %vm2901_vm0, %v2898_v5 }
  0xbb   :  { %2537 = vmatmul.mubr.msk.bf16.gmra.mrb[24].mxu0 %vm250_vm4, %v228_v16 }
  0xbc   :  { %2602 = vmatprep.mubr.msk.bf16.mxu0 %vm2901_vm0, %v2898_v5 }
  0xc3   :  { %2603 = vmatmul.mubr.bf16.vlgmr.msra.gmra.mrb[28].mxu0 %v2903_v17 }
  0xc4   :  { %2607 = vmatpush3.bf16.msra.mxu0 %v3049_v40  ;;  %2608 = vmatprep.mubr.msk.bf16.mxu0 %vm2901_vm0, %v2898_v5 }
  0xc5   :  { %2612 = vmatprep.subr.bf16.mxu0 %v2898_v5 }
 0x15e   :  { %v299_v22 = vpop.f32.mrb[0].mxu0 }
 0x15f   :  { %v300_v23 = vadd.f32 %v3118_v21, %v299_v22  ;;  %v2514_v24 = vpop.f32.mrb[1].mxu0 }
 0x160   :  { %v302_v25 = vpop.f32.mrb[2].mxu0 }
 0x161   :  { %v303_v26 = vadd.f32 %v3118_v21, %v302_v25  ;;  %v2515_v27 = vpop.f32.mrb[3].mxu0  ;;  %v353_v29 = vmax.f32 %v300_v23, 0.0  ;;  %v3162_v25 = vpop.permute.xlu1 %680 }
 0x163   :  { %v354_v30 = vmax.f32 %v303_v26, 0.0 }
 0x165   :  { %v3125_v31 = vpack.c.bf16 %v354_v30, %v353_v29  ;;  %v2370_v30 = vld [vmem:[%s3529_s2 + $0x1] ss:$0 sm:$0xff] }
 0x166   :  { %v307_v33 = vpop.f32.mrb[4].mxu0 }
 0x167   :  { %v308_v34 = vadd.f32 %v3118_v21, %v307_v33  ;;  %v2518_v35 = vpop.f32.mrb[5].mxu0  ;;  %2543 = vmatmul.mubr.msk.bf16.vlgmr.msra.gmra.mrb[0].mxu1 %vm177_vm1, %v3125_v31 }
 0x168   :  { %v310_v36 = vpop.f32.mrb[6].mxu0  ;;  %2546 = vmatprep.mubr.msk.bf16.mxu1 %vm2901_vm0, %v2898_v5  ;;  %2571 = vmatpush3.bf16.msra.mxu1 %v513_v32 }
 0x169   :  { %v355_v37 = vmax.f32 %v308_v34, 0.0  ;;  %v311_v38 = vadd.f32 %v3118_v21, %v310_v36  ;;  %v2519_v39 = vpop.f32.mrb[7].mxu0  ;;  %2642 = vmatprep.subr.bf16.mxu1 %v2898_v5 }
 0x16b   :  { %v356_v41 = vmax.f32 %v311_v38, 0.0 }
 0x16d   :  { %v3135_v42 = vpack.c.bf16 %v356_v41, %v355_v37 }
 0x16e   :  { %v315_v43 = vpop.f32.mrb[8].mxu0 }
 0x16f   :  { %v316_v44 = vadd.f32 %v3118_v21, %v315_v43  ;;  %v2522_v45 = vpop.f32.mrb[9].mxu0  ;;  %2547 = vmatmul.mubr.msk.bf16.gmra.mrb[4].mxu1 %vm177_vm1, %v3135_v42 }
 0x170   :  { %v318_v46 = vpop.f32.mrb[10].mxu0  ;;  %2550 = vmatprep.mubr.msk.bf16.mxu1 %vm2901_vm0, %v2898_v5 }
 0x171   :  { %v357_v47 = vmax.f32 %v316_v44, 0.0  ;;  %v319_v48 = vadd.f32 %v3118_v21, %v318_v46  ;;  %v2523_v49 = vpop.f32.mrb[11].mxu0 }
 0x173   :  { %v358_v50 = vmax.f32 %v319_v48, 0.0 }
 0x175   :  { %v368_v51 = vpack.c.bf16 %v358_v50, %v357_v47 }
 0x176   :  { %v323_v52 = vpop.f32.mrb[12].mxu0 }
 0x177   :  { %v324_v53 = vadd.f32 %v3118_v21, %v323_v52  ;;  %v2526_v54 = vpop.f32.mrb[13].mxu0  ;;  %2551 = vmatmul.mubr.msk.bf16.gmra.mrb[8].mxu1 %vm177_vm1, %v368_v51 }
 0x178   :  { %v326_v55 = vpop.f32.mrb[14].mxu0  ;;  %2554 = vmatprep.mubr.msk.bf16.mxu1 %vm2901_vm0, %v2898_v5 }
 0x179   :  { %v359_v56 = vmax.f32 %v324_v53, 0.0  ;;  %v327_v57 = vadd.f32 %v3118_v21, %v326_v55  ;;  %v2527_v58 = vpop.f32.mrb[15].mxu0 }
 0x17b   :  { %v360_v59 = vmax.f32 %v327_v57, 0.0 }
 0x17d   :  { %v369_v60 = vpack.c.bf16 %v360_v59, %v359_v56 }
 0x17e   :  { %v331_v61 = vpop.f32.mrb[16].mxu0 }
 0x17f   :  { %v332_v62 = vadd.f32 %v3118_v21, %v331_v61  ;;  %v2530_v63 = vpop.f32.mrb[17].mxu0  ;;  %2555 = vmatmul.mubr.msk.bf16.gmra.mrb[12].mxu1 %vm177_vm1, %v369_v60 }
 0x180   :  { %v334_v0 = vpop.f32.mrb[18].mxu0  ;;  %2558 = vmatprep.mubr.msk.bf16.mxu1 %vm2901_vm0, %v2898_v5 }
 0x181   :  { %v361_v1 = vmax.f32 %v332_v62, 0.0  ;;  %v335_v2 = vadd.f32 %v3118_v21, %v334_v0  ;;  %v2531_v3 = vpop.f32.mrb[19].mxu0 }
 0x183   :  { %v362_v4 = vmax.f32 %v335_v2, 0.0 }
 0x185   :  { %v370_v6 = vpack.c.bf16 %v362_v4, %v361_v1 }
 0x186   :  { %v339_v7 = vpop.f32.mrb[20].mxu0 }
 0x187   :  { %v340_v8 = vadd.f32 %v3118_v21, %v339_v7  ;;  %v2534_v9 = vpop.f32.mrb[21].mxu0  ;;  %2559 = vmatmul.mubr.msk.bf16.gmra.mrb[16].mxu1 %vm177_vm1, %v370_v6 }
 0x188   :  { %v342_v10 = vpop.f32.mrb[22].mxu0  ;;  %2562 = vmatprep.mubr.msk.bf16.mxu1 %vm2901_vm0, %v2898_v5 }
 0x189   :  { %v363_v11 = vmax.f32 %v340_v8, 0.0  ;;  %v343_v12 = vadd.f32 %v3118_v21, %v342_v10  ;;  %v2535_v13 = vpop.f32.mrb[23].mxu0 }
 0x18b   :  { %v364_v14 = vmax.f32 %v343_v12, 0.0 }
 0x18d   :  { %v371_v15 = vpack.c.bf16 %v364_v14, %v363_v11 }
 0x18e   :  { %v347_v16 = vpop.f32.mrb[24].mxu0 }
 0x18f   :  { %2563 = vmatmul.mubr.msk.bf16.gmra.mrb[20].mxu1 %vm177_vm1, %v371_v15  ;;  %v348_v18 = vadd.f32 %v3118_v21, %v347_v16  ;;  %v2538_v19 = vpop.f32.mrb[25].mxu0 }
 0x190   :  { %2566 = vmatprep.mubr.msk.bf16.mxu1 %vm2901_vm0, %v2898_v5  ;;  %v350_v20 = vpop.f32.mrb[26].mxu0 }
 0x191   :  { %v365_v22 = vmax.f32 %v348_v18, 0.0  ;;  %v2539_v23 = vpop.f32.mrb[27].mxu0  ;;  %v2378_v20 = vld [vmem:[%s3529_s2 + $0x3] ss:$0 sm:$0xff] }
 0x193   :  { %v372_v24 = vpack.c.bf16 %v365_v22, %v365_v22 }
 0x196   :  { %v662_v26 = vpop.f32.mrb[28].mxu0 }
 0x197   :  { %2567 = vmatmul.mubr.msk.bf16.gmra.mrb[24].mxu1 %vm177_vm1, %v372_v24  ;;  %v2604_v27 = vpop.f32.mrb[29].mxu0  ;;  %v683_v28 = vadd.f32 %v3162_v25, %v662_v26 }
 0x198   :  { %2572 = vmatprep.mubr.msk.bf16.mxu1 %vm2901_vm0, %v2898_v5  ;;  %v665_v21 = vpop.f32.mrb[30].mxu0 }
 0x199   :  { %v2605_v29 = vpop.f32.mrb[31].mxu0  ;;  %685 = vrot.lane.b32.xlu0 %v683_v28, %s2905_s19 }
 0x19f   :  { %2573 = vmatmul.mubr.msk.bf16.vlgmr.msra.gmra.mrb[28].mxu1 %vm177_vm1, %v3125_v31 }
 0x1a0   :  { %2576 = vmatprep.mubr.msk.bf16.mxu1 %vm2901_vm0, %v2898_v5  ;;  %2643 = vmatpush3.bf16.msra.mxu1 %v3049_v40 }
 0x1a1   :  { %2654 = vmatprep.subr.bf16.mxu1 %v2898_v5 }
 0x1a7   :  { %2577 = vmatmul.mubr.msk.bf16.gmra.mrb[32].mxu1 %vm177_vm1, %v3135_v42 }
 0x1a8   :  { %2580 = vmatprep.mubr.msk.bf16.mxu1 %vm2901_vm0, %v2898_v5 }
 0x1af   :  { %2581 = vmatmul.mubr.msk.bf16.gmra.mrb[36].mxu1 %vm177_vm1, %v368_v51 }
 0x1b0   :  { %2584 = vmatprep.mubr.msk.bf16.mxu1 %vm2901_vm0, %v2898_v5 }
 0x1b7   :  { %2585 = vmatmul.mubr.msk.bf16.gmra.mrb[40].mxu1 %vm177_vm1, %v369_v60 }
 0x1b8   :  { %2588 = vmatprep.mubr.msk.bf16.mxu1 %vm2901_vm0, %v2898_v5 }
 0x1bf   :  { %2589 = vmatmul.mubr.msk.bf16.gmra.mrb[44].mxu1 %vm177_vm1, %v370_v6 }
 0x1c0   :  { %2592 = vmatprep.mubr.msk.bf16.mxu1 %vm2901_vm0, %v2898_v5 }
 0x1c7   :  { %2593 = vmatmul.mubr.msk.bf16.gmra.mrb[48].mxu1 %vm177_vm1, %v371_v15 }
 0x1c8   :  { %2596 = vmatprep.mubr.msk.bf16.mxu1 %vm2901_vm0, %v2898_v5 }
 0x1cf   :  { %2597 = vmatmul.mubr.msk.bf16.gmra.mrb[52].mxu1 %vm177_vm1, %v372_v24 }
 0x1d0   :  { %2644 = vmatprep.mubr.msk.bf16.mxu1 %vm2901_vm0, %v2898_v5 }
 0x20b   :  { %v686_v3 = vpop.permute.xlu0 %685 }
 0x23a   :  { %v438_v31 = vpop.f32.mrb[0].mxu1 }
 0x23b   :  { %v439_v32 = vadd.f32 %v2370_v30, %v438_v31  ;;  %v2544_v33 = vpop.f32.mrb[1].mxu1 }
 0x23c   :  { %v441_v34 = vpop.f32.mrb[2].mxu1 }
 0x23d   :  { %493 = vst.msk [vmem:[#allocation2] sm:$0xff] %vm492_vm6, %v439_v32  ;;  %v442_v35 = vadd.f32 %v2370_v30, %v441_v34  ;;  %v2545_v36 = vpop.f32.mrb[3].mxu1 }
 0x23f   :  { %494 = vst.msk [vmem:[#allocation2 + $0x8] sm:$0xff] %vm492_vm6, %v442_v35 }
 0x242   :  { %v446_v37 = vpop.f32.mrb[4].mxu1 }
 0x243   :  { %v447_v38 = vadd.f32 %v2370_v30, %v446_v37  ;;  %v2548_v39 = vpop.f32.mrb[5].mxu1 }
 0x244   :  { %v449_v41 = vpop.f32.mrb[6].mxu1  ;;  %v3199_v42 = vld [vmem:[#allocation2] sm:$0xff] }
 0x245   :  { %495 = vst.msk [vmem:[#allocation2 + $0x10] sm:$0xff] %vm492_vm6, %v447_v38  ;;  %v450_v43 = vadd.f32 %v2370_v30, %v449_v41  ;;  %v2549_v44 = vpop.f32.mrb[7].mxu1  ;;  %v668_v45 = vadd.f32 %v662_v26, %v3199_v42 }
 0x247   :  { %496 = vst.msk [vmem:[#allocation2 + $0x18] sm:$0xff] %vm492_vm6, %v450_v43  ;;  %v2387_v46 = vmul.f32 -1.442695, %v668_v45 }
 0x249   :  { %2732 = vpow2.f32 %v2387_v46 }
 0x24a   :  { %v454_v47 = vpop.f32.mrb[8].mxu1 }
 0x24b   :  { %v455_v48 = vadd.f32 %v2370_v30, %v454_v47  ;;  %v2552_v49 = vpop.f32.mrb[9].mxu1 }
 0x24c   :  { %v457_v50 = vpop.f32.mrb[10].mxu1 }
 0x24d   :  { %497 = vst.msk [vmem:[#allocation2 + $0x20] sm:$0xff] %vm492_vm6, %v455_v48  ;;  %v458_v51 = vadd.f32 %v2370_v30, %v457_v50  ;;  %v2553_v52 = vpop.f32.mrb[11].mxu1 }
 0x24f   :  { %498 = vst.msk [vmem:[#allocation2 + $0x28] sm:$0xff] %vm492_vm6, %v458_v51 }
 0x252   :  { %v462_v53 = vpop.f32.mrb[12].mxu1 }
 0x253   :  { %v2733_v54 = vpop.eup %2732  ;;  %v463_v55 = vadd.f32 %v2370_v30, %v462_v53  ;;  %v2556_v56 = vpop.f32.mrb[13].mxu1 }
 0x254   :  { %v672_v57 = vadd.f32 1.0, %v2733_v54  ;;  %v465_v58 = vpop.f32.mrb[14].mxu1 }
 0x255   :  { %499 = vst.msk [vmem:[#allocation2 + $0x30] sm:$0xff] %vm492_vm6, %v463_v55  ;;  %v466_v59 = vadd.f32 %v2370_v30, %v465_v58  ;;  %v2557_v60 = vpop.f32.mrb[15].mxu1 }
 0x256   :  { %2734 = vrcp.f32 %v672_v57 }
 0x257   :  { %500 = vst.msk [vmem:[#allocation2 + $0x38] sm:$0xff] %vm492_vm6, %v466_v59 }
 0x25a   :  { %v470_v61 = vpop.f32.mrb[16].mxu1 }
 0x25b   :  { %v471_v62 = vadd.f32 %v2370_v30, %v470_v61  ;;  %v2560_v63 = vpop.f32.mrb[17].mxu1 }
 0x25c   :  { %v473_v0 = vpop.f32.mrb[18].mxu1 }
 0x25d   :  { %501 = vst.msk [vmem:[#allocation2 + $0x40] sm:$0xff] %vm492_vm6, %v471_v62  ;;  %v474_v1 = vadd.f32 %v2370_v30, %v473_v0  ;;  %v2561_v2 = vpop.f32.mrb[19].mxu1 }
 0x25f   :  { %502 = vst.msk [vmem:[#allocation2 + $0x48] sm:$0xff] %vm492_vm6, %v474_v1 }
 0x260   :  { %v3210_v4 = vpop.eup %2734 }
 0x261   :  { %v688_v6 = vmul.f32 %v3210_v4, %v686_v3  ;;  %v695_v2 = vsub.f32 1.0, %v3210_v4 }
 0x262   :  { %v478_v7 = vpop.f32.mrb[20].mxu1 }
 0x263   :  { %690 = vrot.lane.b32.xlu1 %v688_v6, %s2904_s14  ;;  %v479_v8 = vadd.f32 %v2370_v30, %v478_v7  ;;  %v2564_v9 = vpop.f32.mrb[21].mxu1  ;;  %v701_v6 = vmul.f32 0.0, %v3210_v4 }
 0x264   :  { %v481_v10 = vpop.f32.mrb[22].mxu1 }
 0x265   :  { %503 = vst.msk [vmem:[#allocation2 + $0x50] sm:$0xff] %vm492_vm6, %v479_v8  ;;  %v482_v11 = vadd.f32 %v2370_v30, %v481_v10  ;;  %v2565_v12 = vpop.f32.mrb[23].mxu1 }
 0x267   :  { %504 = vst.msk [vmem:[#allocation2 + $0x58] sm:$0xff] %vm492_vm6, %v482_v11 }
 0x26a   :  { %v486_v13 = vpop.f32.mrb[24].mxu1 }
 0x26b   :  { %v487_v14 = vadd.f32 %v2370_v30, %v486_v13  ;;  %v2568_v15 = vpop.f32.mrb[25].mxu1 }
 0x26c   :  { %v489_v16 = vpop.f32.mrb[26].mxu1 }
 0x26d   :  { %505 = vst.msk [vmem:[#allocation2 + $0x60] sm:$0xff] %vm492_vm6, %v487_v14  ;;  %v2569_v18 = vpop.f32.mrb[27].mxu1  ;;  %v704_v14 = vld [vmem:[#allocation2 + $0x8] sm:$0xff] }
 0x272   :  { %v549_v19 = vpop.f32.mrb[28].mxu1 }
 0x273   :  { %v2574_v22 = vpop.f32.mrb[29].mxu1 }
 0x274   :  { %v551_v23 = vpop.f32.mrb[30].mxu1 }
 0x275   :  { %v552_v24 = vadd.f32 %v2378_v20, %v551_v23  ;;  %v2575_v26 = vpop.f32.mrb[31].mxu1 }
 0x277   :  { %603 = vst.msk [vmem:[#allocation3] sm:$0xff] %vm602_vm7, %v552_v24 }
 0x27a   :  { %v556_v27 = vpop.f32.mrb[32].mxu1 }
 0x27b   :  { %v557_v28 = vadd.f32 %v2378_v20, %v556_v27  ;;  %v2578_v21 = vpop.f32.mrb[33].mxu1 }
 0x27c   :  { %v559_v29 = vpop.f32.mrb[34].mxu1 }
 0x27d   :  { %604 = vst.msk [vmem:[#allocation3 + $0x8] sm:$0xff] %vm602_vm7, %v557_v28  ;;  %v560_v30 = vadd.f32 %v2378_v20, %v559_v29  ;;  %v2579_v31 = vpop.f32.mrb[35].mxu1 }
 0x27f   :  { %605 = vst.msk [vmem:[#allocation3 + $0x10] sm:$0xff] %vm602_vm7, %v560_v30 }
 0x282   :  { %v564_v32 = vpop.f32.mrb[36].mxu1 }
 0x283   :  { %v565_v33 = vadd.f32 %v2378_v20, %v564_v32  ;;  %v2582_v34 = vpop.f32.mrb[37].mxu1 }
 0x284   :  { %v567_v35 = vpop.f32.mrb[38].mxu1 }
 0x285   :  { %606 = vst.msk [vmem:[#allocation3 + $0x18] sm:$0xff] %vm602_vm7, %v565_v33  ;;  %v568_v36 = vadd.f32 %v2378_v20, %v567_v35  ;;  %v2583_v37 = vpop.f32.mrb[39].mxu1 }
 0x287   :  { %607 = vst.msk [vmem:[#allocation3 + $0x20] sm:$0xff] %vm602_vm7, %v568_v36 }
 0x28a   :  { %v572_v38 = vpop.f32.mrb[40].mxu1 }
 0x28b   :  { %v573_v39 = vadd.f32 %v2378_v20, %v572_v38  ;;  %v2586_v41 = vpop.f32.mrb[41].mxu1 }
 0x28c   :  { %v575_v43 = vpop.f32.mrb[42].mxu1 }
 0x28d   :  { %608 = vst.msk [vmem:[#allocation3 + $0x28] sm:$0xff] %vm602_vm7, %v573_v39  ;;  %v576_v44 = vadd.f32 %v2378_v20, %v575_v43  ;;  %v2587_v45 = vpop.f32.mrb[43].mxu1  ;;  %v780_v39 = vld [vmem:[#allocation2 + $0x10] sm:$0xff] }
 0x28f   :  { %609 = vst.msk [vmem:[#allocation3 + $0x30] sm:$0xff] %vm602_vm7, %v576_v44 }
 0x292   :  { %v580_v46 = vpop.f32.mrb[44].mxu1 }
 0x293   :  { %v581_v47 = vadd.f32 %v2378_v20, %v580_v46  ;;  %v2590_v48 = vpop.f32.mrb[45].mxu1 }
 0x294   :  { %v583_v49 = vpop.f32.mrb[46].mxu1 }
 0x295   :  { %610 = vst.msk [vmem:[#allocation3 + $0x38] sm:$0xff] %vm602_vm7, %v581_v47  ;;  %v584_v50 = vadd.f32 %v2378_v20, %v583_v49  ;;  %v2591_v51 = vpop.f32.mrb[47].mxu1 }
 0x297   :  { %611 = vst.msk [vmem:[#allocation3 + $0x40] sm:$0xff] %vm602_vm7, %v584_v50 }
 0x29a   :  { %v588_v52 = vpop.f32.mrb[48].mxu1 }
 0x29b   :  { %v589_v53 = vadd.f32 %v2378_v20, %v588_v52  ;;  %v2594_v54 = vpop.f32.mrb[49].mxu1 }
 0x29c   :  { %v591_v55 = vpop.f32.mrb[50].mxu1 }
 0x29d   :  { %612 = vst.msk [vmem:[#allocation3 + $0x48] sm:$0xff] %vm602_vm7, %v589_v53  ;;  %v592_v56 = vadd.f32 %v2378_v20, %v591_v55  ;;  %v2595_v57 = vpop.f32.mrb[51].mxu1 }
 0x29f   :  { %613 = vst.msk [vmem:[#allocation3 + $0x50] sm:$0xff] %vm602_vm7, %v592_v56 }
 0x2a2   :  { %v596_v58 = vpop.f32.mrb[52].mxu1 }
 0x2a3   :  { %v597_v59 = vadd.f32 %v2378_v20, %v596_v58  ;;  %v2598_v60 = vpop.f32.mrb[53].mxu1 }
 0x2a4   :  { %v599_v61 = vpop.f32.mrb[54].mxu1 }
 0x2a5   :  { %614 = vst.msk [vmem:[#allocation3 + $0x58] sm:$0xff] %vm602_vm7, %v597_v59  ;;  %v2599_v62 = vpop.f32.mrb[55].mxu1 }
 0x2d5   :  { %v691_v63 = vpop.permute.xlu1 %690 }
 0x2d6   :  { %v693_v0 = vadd.f32 %v691_v63, %v3199_v42 }
 0x2d8   :  { %2736 = vtanh.f32 %v693_v0  ;;  %v856_v0 = vld [vmem:[#allocation2 + $0x18] sm:$0xff] }
 0x2e2   :  { %v2737_v1 = vpop.eup %2736 }
 0x2e3   :  { %697 = vrot.lane.b32.xlu0 %v2737_v1, %s2906_s23 }
 0x355   :  { %v698_v3 = vpop.permute.xlu0 %697 }
 0x356   :  { %v700_v7 = vmul.f32 %v698_v3, %v695_v2 }
 0x358   :  { %v702_v8 = vadd.f32 %v701_v6, %v700_v7 }
 0x35a   :  { %v705_v9 = vpack.c.bf16 %v702_v8, %v702_v8 }
 0x35c   :  { %707 = vrot.lane.b32.xlu1 %v705_v9, %s2906_s23 }
 0x3ce   :  { %v708_v10 = vpop.permute.xlu1 %707 }
 0x3cf   :  { %2609 = vmatmul.mubr.msk.bf16.vlgmr.msra.gmra.mrb[32].mxu0 %vm199_vm2, %v708_v10 }
 0x3d0   :  { %2613 = vmatpush3.bf16.msra.mxu0 %v3049_v40  ;;  %2614 = vmatprep.mubr.msk.bf16.mxu0 %vm2901_vm0, %v2898_v5 }
 0x3d1   :  { %2618 = vmatprep.subr.bf16.mxu0 %v2898_v5 }
 0x4a2   :  { %v746_v42 = vpop.f32.mrb[32].mxu0 }
 0x4a3   :  { %v759_v11 = vadd.f32 %v746_v42, %v3162_v25  ;;  %v2610_v12 = vpop.f32.mrb[33].mxu0  ;;  %v752_v15 = vadd.f32 %v746_v42, %v704_v14 }
 0x4a4   :  { %v749_v4 = vpop.f32.mrb[34].mxu0 }
 0x4a5   :  { %761 = vrot.lane.b32.xlu0 %v759_v11, %s2905_s19  ;;  %v2611_v13 = vpop.f32.mrb[35].mxu0  ;;  %v2390_v16 = vmul.f32 -1.442695, %v752_v15 }
 0x4a7   :  { %2738 = vpow2.f32 %v2390_v16 }
 0x4b1   :  { %v2739_v18 = vpop.eup %2738 }
 0x4b2   :  { %v756_v19 = vadd.f32 1.0, %v2739_v18 }
 0x4b4   :  { %2740 = vrcp.f32 %v756_v19 }
 0x4be   :  { %v2741_v20 = vpop.eup %2740 }
 0x4bf   :  { %v771_v28 = vsub.f32 1.0, %v2741_v20  ;;  %v777_v29 = vmul.f32 %v2741_v20, %v702_v8 }
 0x517   :  { %v762_v22 = vpop.permute.xlu0 %761 }
 0x518   :  { %v764_v23 = vmul.f32 %v2741_v20, %v762_v22 }
 0x51a   :  { %766 = vrot.lane.b32.xlu1 %v764_v23, %s2904_s14 }
 0x58c   :  { %v767_v24 = vpop.permute.xlu1 %766 }
 0x58d   :  { %v769_v26 = vadd.f32 %v767_v24, %v704_v14 }
 0x58f   :  { %2742 = vtanh.f32 %v769_v26  ;;  %v932_v26 = vld [vmem:[#allocation2 + $0x20] sm:$0xff] }
 0x599   :  { %v2743_v27 = vpop.eup %2742 }
 0x59a   :  { %773 = vrot.lane.b32.xlu0 %v2743_v27, %s2906_s23 }
 0x60c   :  { %v774_v21 = vpop.permute.xlu0 %773 }
 0x60d   :  { %v776_v30 = vmul.f32 %v774_v21, %v771_v28 }
 0x60f   :  { %v778_v31 = vadd.f32 %v777_v29, %v776_v30 }
 0x611   :  { %v781_v32 = vpack.c.bf16 %v778_v31, %v778_v31 }
 0x613   :  { %783 = vrot.lane.b32.xlu1 %v781_v32, %s2906_s23 }
 0x685   :  { %v784_v33 = vpop.permute.xlu1 %783 }
 0x686   :  { %2615 = vmatmul.mubr.msk.bf16.vlgmr.msra.gmra.mrb[36].mxu0 %vm199_vm2, %v784_v33 }
 0x687   :  { %2619 = vmatpush3.bf16.msra.mxu0 %v3049_v40  ;;  %2620 = vmatprep.mubr.msk.bf16.mxu0 %vm2901_vm0, %v2898_v5 }
 0x688   :  { %2624 = vmatprep.subr.bf16.mxu0 %v2898_v5 }
 0x759   :  { %v822_v34 = vpop.f32.mrb[36].mxu0 }
 0x75a   :  { %v835_v35 = vadd.f32 %v822_v34, %v3162_v25  ;;  %v2616_v36 = vpop.f32.mrb[37].mxu0  ;;  %v828_v41 = vadd.f32 %v822_v34, %v780_v39 }
 0x75b   :  { %v825_v37 = vpop.f32.mrb[38].mxu0 }
 0x75c   :  { %837 = vrot.lane.b32.xlu0 %v835_v35, %s2905_s19  ;;  %v2617_v38 = vpop.f32.mrb[39].mxu0  ;;  %v2392_v43 = vmul.f32 -1.442695, %v828_v41 }
 0x75e   :  { %2744 = vpow2.f32 %v2392_v43 }
 0x768   :  { %v2745_v44 = vpop.eup %2744 }
 0x769   :  { %v832_v45 = vadd.f32 1.0, %v2745_v44 }
 0x76b   :  { %2746 = vrcp.f32 %v832_v45 }
 0x775   :  { %v2747_v46 = vpop.eup %2746 }
 0x776   :  { %v847_v52 = vsub.f32 1.0, %v2747_v46  ;;  %v853_v54 = vmul.f32 %v2747_v46, %v778_v31 }
 0x7ce   :  { %v838_v47 = vpop.permute.xlu0 %837 }
 0x7cf   :  { %v840_v48 = vmul.f32 %v2747_v46, %v838_v47 }
 0x7d1   :  { %842 = vrot.lane.b32.xlu1 %v840_v48, %s2904_s14 }
 0x843   :  { %v843_v49 = vpop.permute.xlu1 %842 }
 0x844   :  { %v845_v50 = vadd.f32 %v843_v49, %v780_v39 }
 0x846   :  { %2748 = vtanh.f32 %v845_v50  ;;  %v1008_v50 = vld [vmem:[#allocation2 + $0x28] sm:$0xff] }
 0x850   :  { %v2749_v51 = vpop.eup %2748 }
 0x851   :  { %849 = vrot.lane.b32.xlu0 %v2749_v51, %s2906_s23 }
 0x8c3   :  { %v850_v53 = vpop.permute.xlu0 %849 }
 0x8c4   :  { %v852_v55 = vmul.f32 %v850_v53, %v847_v52 }
 0x8c6   :  { %v854_v56 = vadd.f32 %v853_v54, %v852_v55 }
 0x8c8   :  { %v857_v57 = vpack.c.bf16 %v854_v56, %v854_v56 }
 0x8ca   :  { %859 = vrot.lane.b32.xlu1 %v857_v57, %s2906_s23 }
 0x93c   :  { %v860_v58 = vpop.permute.xlu1 %859 }
 0x93d   :  { %2621 = vmatmul.mubr.msk.bf16.vlgmr.msra.gmra.mrb[40].mxu0 %vm199_vm2, %v860_v58 }
 0x93e   :  { %2625 = vmatpush3.bf16.msra.mxu0 %v3049_v40  ;;  %2626 = vmatprep.mubr.msk.bf16.mxu0 %vm2901_vm0, %v2898_v5 }
 0x93f   :  { %2630 = vmatprep.subr.bf16.mxu0 %v2898_v5 }
 0xa10   :  { %v898_v59 = vpop.f32.mrb[40].mxu0 }
 0xa11   :  { %v911_v60 = vadd.f32 %v898_v59, %v3162_v25  ;;  %v2622_v61 = vpop.f32.mrb[41].mxu0  ;;  %v904_v1 = vadd.f32 %v898_v59, %v856_v0 }
 0xa12   :  { %v901_v62 = vpop.f32.mrb[42].mxu0 }
 0xa13   :  { %913 = vrot.lane.b32.xlu0 %v911_v60, %s2905_s19  ;;  %v2623_v63 = vpop.f32.mrb[43].mxu0  ;;  %v2394_v2 = vmul.f32 -1.442695, %v904_v1 }
 0xa15   :  { %2750 = vpow2.f32 %v2394_v2 }
 0xa1f   :  { %v2751_v3 = vpop.eup %2750 }
 0xa20   :  { %v908_v6 = vadd.f32 1.0, %v2751_v3 }
 0xa22   :  { %2752 = vrcp.f32 %v908_v6 }
 0xa2c   :  { %v2753_v7 = vpop.eup %2752 }
 0xa2d   :  { %v923_v12 = vsub.f32 1.0, %v2753_v7  ;;  %v929_v13 = vmul.f32 %v2753_v7, %v854_v56 }
 0xa85   :  { %v914_v8 = vpop.permute.xlu0 %913 }
 0xa86   :  { %v916_v9 = vmul.f32 %v2753_v7, %v914_v8 }
 0xa88   :  { %918 = vrot.lane.b32.xlu1 %v916_v9, %s2904_s14 }
 0xafa   :  { %v919_v10 = vpop.permute.xlu1 %918 }
 0xafb   :  { %v921_v42 = vadd.f32 %v919_v10, %v856_v0 }
 0xafd   :  { %2754 = vtanh.f32 %v921_v42  ;;  %v1084_v42 = vld [vmem:[#allocation2 + $0x30] sm:$0xff] }
 0xb07   :  { %v2755_v11 = vpop.eup %2754 }
 0xb08   :  { %925 = vrot.lane.b32.xlu0 %v2755_v11, %s2906_s23 }
 0xb7a   :  { %v926_v4 = vpop.permute.xlu0 %925 }
 0xb7b   :  { %v928_v14 = vmul.f32 %v926_v4, %v923_v12 }
 0xb7d   :  { %v930_v15 = vadd.f32 %v929_v13, %v928_v14 }
 0xb7f   :  { %v933_v16 = vpack.c.bf16 %v930_v15, %v930_v15 }
 0xb81   :  { %935 = vrot.lane.b32.xlu1 %v933_v16, %s2906_s23 }
 0xbf3   :  { %v936_v18 = vpop.permute.xlu1 %935 }
 0xbf4   :  { %2627 = vmatmul.mubr.msk.bf16.vlgmr.msra.gmra.mrb[44].mxu0 %vm199_vm2, %v936_v18 }
 0xbf5   :  { %2631 = vmatpush3.bf16.msra.mxu0 %v3049_v40  ;;  %2632 = vmatprep.mubr.msk.bf16.mxu0 %vm2901_vm0, %v2898_v5 }
 0xbf6   :  { %2636 = vmatprep.subr.bf16.mxu0 %v2898_v5 }
 0xcc7   :  { %v974_v19 = vpop.f32.mrb[44].mxu0 }
 0xcc8   :  { %v987_v20 = vadd.f32 %v974_v19, %v3162_v25  ;;  %v2628_v22 = vpop.f32.mrb[45].mxu0  ;;  %v980_v27 = vadd.f32 %v974_v19, %v932_v26 }
 0xcc9   :  { %v977_v23 = vpop.f32.mrb[46].mxu0 }
 0xcca   :  { %989 = vrot.lane.b32.xlu0 %v987_v20, %s2905_s19  ;;  %v2629_v24 = vpop.f32.mrb[47].mxu0  ;;  %v2396_v28 = vmul.f32 -1.442695, %v980_v27 }
 0xccc   :  { %2756 = vpow2.f32 %v2396_v28 }
 0xcd6   :  { %v2757_v21 = vpop.eup %2756 }
 0xcd7   :  { %v984_v29 = vadd.f32 1.0, %v2757_v21  ;;  %v3301_v21 = vld [vmem:[%s3528_s1 + $0x18] sm:$0xff]  }
 0xcd9   :  { %2758 = vrcp.f32 %v984_v29 }
 0xce3   :  { %v2759_v30 = vpop.eup %2758 }
 0xce4   :  { %v999_v36 = vsub.f32 1.0, %v2759_v30  ;;  %v1005_v38 = vmul.f32 %v2759_v30, %v930_v15 }
 0xd3c   :  { %v990_v31 = vpop.permute.xlu0 %989 }
 0xd3d   :  { %v992_v32 = vmul.f32 %v2759_v30, %v990_v31 }
 0xd3f   :  { %994 = vrot.lane.b32.xlu1 %v992_v32, %s2904_s14 }
 0xdb1   :  { %v995_v33 = vpop.permute.xlu1 %994 }
 0xdb2   :  { %v997_v34 = vadd.f32 %v995_v33, %v932_v26 }
 0xdb4   :  { %2760 = vtanh.f32 %v997_v34  ;;  %v1160_v34 = vld [vmem:[#allocation2 + $0x38] sm:$0xff] }
 0xdbe   :  { %v2761_v35 = vpop.eup %2760 }
 0xdbf   :  { %1001 = vrot.lane.b32.xlu0 %v2761_v35, %s2906_s23 }
 0xe31   :  { %v1002_v37 = vpop.permute.xlu0 %1001 }
 0xe32   :  { %v1004_v39 = vmul.f32 %v1002_v37, %v999_v36 }
 0xe34   :  { %v1006_v41 = vadd.f32 %v1005_v38, %v1004_v39 }
 0xe36   :  { %v1009_v43 = vpack.c.bf16 %v1006_v41, %v1006_v41 }
 0xe38   :  { %1011 = vrot.lane.b32.xlu1 %v1009_v43, %s2906_s23 }
 0xeaa   :  { %v1012_v44 = vpop.permute.xlu1 %1011 }
 0xeab   :  { %2633 = vmatmul.mubr.msk.bf16.vlgmr.msra.gmra.mrb[48].mxu0 %vm199_vm2, %v1012_v44 }
 0xeac   :  { %2637 = vmatpush3.bf16.msra.mxu0 %v3049_v40  ;;  %2638 = vmatprep.mubr.msk.bf16.mxu0 %vm2901_vm0, %v2898_v5 }
 0xead   :  { %2648 = vmatprep.subr.bf16.mxu0 %v2898_v5 }
 0xf7e   :  { %v1050_v45 = vpop.f32.mrb[48].mxu0 }
 0xf7f   :  { %v1063_v46 = vadd.f32 %v1050_v45, %v3162_v25  ;;  %v2634_v47 = vpop.f32.mrb[49].mxu0  ;;  %v1056_v51 = vadd.f32 %v1050_v45, %v1008_v50 }
 0xf80   :  { %v1053_v48 = vpop.f32.mrb[50].mxu0 }
 0xf81   :  { %1065 = vrot.lane.b32.xlu0 %v1063_v46, %s2905_s19  ;;  %v2635_v49 = vpop.f32.mrb[51].mxu0  ;;  %v2398_v52 = vmul.f32 -1.442695, %v1056_v51 }
 0xf83   :  { %2762 = vpow2.f32 %v2398_v52 }
 0xf8d   :  { %v2763_v53 = vpop.eup %2762 }
 0xf8e   :  { %v1060_v54 = vadd.f32 1.0, %v2763_v53 }
 0xf90   :  { %2764 = vrcp.f32 %v1060_v54 }
 0xf9a   :  { %v2765_v55 = vpop.eup %2764 }
 0xf9b   :  { %v1075_v61 = vsub.f32 1.0, %v2765_v55  ;;  %v1081_v63 = vmul.f32 %v2765_v55, %v1006_v41 }
 0xff3   :  { %v1066_v56 = vpop.permute.xlu0 %1065 }
 0xff4   :  { %v1068_v57 = vmul.f32 %v2765_v55, %v1066_v56 }
 0xff6   :  { %1070 = vrot.lane.b32.xlu1 %v1068_v57, %s2904_s14 }
0x1068   :  { %v1071_v58 = vpop.permute.xlu1 %1070 }
0x1069   :  { %v1073_v59 = vadd.f32 %v1071_v58, %v1008_v50 }
0x106b   :  { %2766 = vtanh.f32 %v1073_v59  ;;  %v1236_v59 = vld [vmem:[#allocation2 + $0x40] sm:$0xff] }
0x1075   :  { %v2767_v60 = vpop.eup %2766 }
0x1076   :  { %1077 = vrot.lane.b32.xlu0 %v2767_v60, %s2906_s23 }
0x10e8   :  { %v1078_v62 = vpop.permute.xlu0 %1077 }
0x10e9   :  { %v1080_v0 = vmul.f32 %v1078_v62, %v1075_v61 }
0x10eb   :  { %v1082_v1 = vadd.f32 %v1081_v63, %v1080_v0 }
0x10ed   :  { %v1085_v2 = vpack.c.bf16 %v1082_v1, %v1082_v1 }
0x10ef   :  { %1087 = vrot.lane.b32.xlu1 %v1085_v2, %s2906_s23 }
0x1161   :  { %v1088_v3 = vpop.permute.xlu1 %1087 }
0x1162   :  { %2639 = vmatmul.mubr.msk.bf16.vlgmr.msra.gmra.mrb[52].mxu0 %vm199_vm2, %v1088_v3 }
0x1163   :  { %2649 = vmatpush3.bf16.msra.mxu0 %v3049_v40  ;;  %2650 = vmatprep.mubr.msk.bf16.mxu0 %vm2901_vm0, %v2898_v5 }
0x1164   :  { %2660 = vmatprep.subr.bf16.mxu0 %v2898_v5 }
0x1235   :  { %v1126_v6 = vpop.f32.mrb[52].mxu0 }
0x1236   :  { %v1139_v7 = vadd.f32 %v1126_v6, %v3162_v25  ;;  %v2640_v8 = vpop.f32.mrb[53].mxu0  ;;  %v1132_v11 = vadd.f32 %v1126_v6, %v1084_v42 }
0x1237   :  { %v1129_v9 = vpop.f32.mrb[54].mxu0 }
0x1238   :  { %1141 = vrot.lane.b32.xlu0 %v1139_v7, %s2905_s19  ;;  %v2641_v10 = vpop.f32.mrb[55].mxu0  ;;  %v2400_v12 = vmul.f32 -1.442695, %v1132_v11 }
0x123a   :  { %2768 = vpow2.f32 %v2400_v12 }
0x1244   :  { %v2769_v4 = vpop.eup %2768 }
0x1245   :  { %v1136_v13 = vadd.f32 1.0, %v2769_v4 }
0x1247   :  { %2770 = vrcp.f32 %v1136_v13 }
0x1251   :  { %v2771_v40 = vpop.eup %2770 }
0x1252   :  { %v1151_v20 = vsub.f32 1.0, %v2771_v40  ;;  %v1157_v23 = vmul.f32 %v2771_v40, %v1082_v1 }
0x12aa   :  { %v1142_v14 = vpop.permute.xlu0 %1141 }
0x12ab   :  { %v1144_v15 = vmul.f32 %v2771_v40, %v1142_v14 }
0x12ad   :  { %1146 = vrot.lane.b32.xlu1 %v1144_v15, %s2904_s14 }
0x131f   :  { %v1147_v16 = vpop.permute.xlu1 %1146 }
0x1320   :  { %v1149_v18 = vadd.f32 %v1147_v16, %v1084_v42 }
0x1322   :  { %2772 = vtanh.f32 %v1149_v18  ;;  %v1312_v18 = vld [vmem:[#allocation2 + $0x48] sm:$0xff] }
0x132c   :  { %v2773_v19 = vpop.eup %2772 }
0x132d   :  { %1153 = vrot.lane.b32.xlu0 %v2773_v19, %s2906_s23 }
0x139f   :  { %v1154_v22 = vpop.permute.xlu0 %1153 }
0x13a0   :  { %v1156_v24 = vmul.f32 %v1154_v22, %v1151_v20 }
0x13a2   :  { %v1158_v26 = vadd.f32 %v1157_v23, %v1156_v24 }
0x13a4   :  { %v1161_v27 = vpack.c.bf16 %v1158_v26, %v1158_v26 }
0x13a6   :  { %1163 = vrot.lane.b32.xlu1 %v1161_v27, %s2906_s23 }
0x1418   :  { %v1164_v28 = vpop.permute.xlu1 %1163 }
0x1419   :  { %2645 = vmatmul.mubr.msk.bf16.vlgmr.msra.gmra.mrb[56].mxu1 %vm199_vm2, %v1164_v28 }
0x141a   :  { %2655 = vmatpush3.bf16.msra.mxu1 %v3301_v21  ;;  %2656 = vmatprep.mubr.msk.bf16.mxu1 %vm2901_vm0, %v2898_v5 }
0x141b   :  { %2666 = vmatprep.subr.bf16.mxu1 %v2898_v5 }
0x14ec   :  { %v1202_v29 = vpop.f32.mrb[56].mxu1 }
0x14ed   :  { %v1215_v30 = vadd.f32 %v1202_v29, %v3162_v25  ;;  %v2646_v31 = vpop.f32.mrb[57].mxu1  ;;  %v1208_v35 = vadd.f32 %v1202_v29, %v1160_v34 }
0x14ee   :  { %v1205_v32 = vpop.f32.mrb[58].mxu1 }
0x14ef   :  { %1217 = vrot.lane.b32.xlu0 %v1215_v30, %s2905_s19  ;;  %v2647_v33 = vpop.f32.mrb[59].mxu1  ;;  %v2402_v36 = vmul.f32 -1.442695, %v1208_v35 }
0x14f1   :  { %2774 = vpow2.f32 %v2402_v36 }
0x14fb   :  { %v2775_v37 = vpop.eup %2774 }
0x14fc   :  { %v1212_v38 = vadd.f32 1.0, %v2775_v37 }
0x14fe   :  { %2776 = vrcp.f32 %v1212_v38 }
0x1508   :  { %v2777_v39 = vpop.eup %2776 }
0x1509   :  { %v1227_v47 = vsub.f32 1.0, %v2777_v39  ;;  %v1233_v49 = vmul.f32 %v2777_v39, %v1158_v26 }
0x1561   :  { %v1218_v41 = vpop.permute.xlu0 %1217 }
0x1562   :  { %v1220_v43 = vmul.f32 %v2777_v39, %v1218_v41 }
0x1564   :  { %1222 = vrot.lane.b32.xlu1 %v1220_v43, %s2904_s14 }
0x15d6   :  { %v1223_v44 = vpop.permute.xlu1 %1222 }
0x15d7   :  { %v1225_v45 = vadd.f32 %v1223_v44, %v1160_v34 }
0x15d9   :  { %2778 = vtanh.f32 %v1225_v45  ;;  %v1388_v45 = vld [vmem:[#allocation2 + $0x50] sm:$0xff] }
0x15e3   :  { %v2779_v46 = vpop.eup %2778 }
0x15e4   :  { %1229 = vrot.lane.b32.xlu0 %v2779_v46, %s2906_s23 }
0x1656   :  { %v1230_v48 = vpop.permute.xlu0 %1229 }
0x1657   :  { %v1232_v50 = vmul.f32 %v1230_v48, %v1227_v47 }
0x1659   :  { %v1234_v51 = vadd.f32 %v1233_v49, %v1232_v50 }
0x165b   :  { %v1237_v52 = vpack.c.bf16 %v1234_v51, %v1234_v51 }
0x165d   :  { %1239 = vrot.lane.b32.xlu1 %v1237_v52, %s2906_s23 }
0x16cf   :  { %v1240_v53 = vpop.permute.xlu1 %1239 }
0x16d0   :  { %2651 = vmatmul.mubr.msk.bf16.vlgmr.msra.gmra.mrb[56].mxu0 %vm199_vm2, %v1240_v53 }
0x16d1   :  { %2661 = vmatpush3.bf16.msra.mxu0 %v3301_v21  ;;  %2662 = vmatprep.mubr.msk.bf16.mxu0 %vm2901_vm0, %v2898_v5 }
0x16d2   :  { %2672 = vmatprep.subr.bf16.mxu0 %v2898_v5 }
0x17a3   :  { %v1278_v54 = vpop.f32.mrb[56].mxu0 }
0x17a4   :  { %v1291_v55 = vadd.f32 %v1278_v54, %v3162_v25  ;;  %v2652_v56 = vpop.f32.mrb[57].mxu0  ;;  %v1284_v60 = vadd.f32 %v1278_v54, %v1236_v59  ;;  %v1615_v54 = vld [vmem:[%s3528_s1 + $0x28] sm:$0x3] }
0x17a5   :  { %v1281_v57 = vpop.f32.mrb[58].mxu0 }
0x17a6   :  { %1293 = vrot.lane.b32.xlu0 %v1291_v55, %s2905_s19  ;;  %v2653_v58 = vpop.f32.mrb[59].mxu0  ;;  %v2404_v61 = vmul.f32 -1.442695, %v1284_v60  ;;  %v2417_v60 = vld [vmem:[%s3529_s2 + $0x4] ss:$0 sm:$0xff] }
0x17a8   :  { %2780 = vpow2.f32 %v2404_v61 }
0x17b2   :  { %v2781_v62 = vpop.eup %2780 }
0x17b3   :  { %v1288_v63 = vadd.f32 1.0, %v2781_v62 }
0x17b5   :  { %2782 = vrcp.f32 %v1288_v63  ;;  %v3354_v63 = vsel %vm1624_vm8, %v1615_v54, 0 }
0x17bf   :  { %v2783_v0 = vpop.eup %2782 }
0x17c0   :  { %v1303_v8 = vsub.f32 1.0, %v2783_v0  ;;  %v1309_v10 = vmul.f32 %v2783_v0, %v1234_v51 }
0x1818   :  { %v1294_v1 = vpop.permute.xlu0 %1293 }
0x1819   :  { %v1296_v2 = vmul.f32 %v2783_v0, %v1294_v1 }
0x181b   :  { %1298 = vrot.lane.b32.xlu1 %v1296_v2, %s2904_s14 }
0x188d   :  { %v1299_v3 = vpop.permute.xlu1 %1298 }
0x188e   :  { %v1301_v6 = vadd.f32 %v1299_v3, %v1236_v59 }
0x1890   :  { %2784 = vtanh.f32 %v1301_v6 }
0x189a   :  { %v2785_v7 = vpop.eup %2784 }
0x189b   :  { %1305 = vrot.lane.b32.xlu0 %v2785_v7, %s2906_s23 }
0x190d   :  { %v1306_v9 = vpop.permute.xlu0 %1305 }
0x190e   :  { %v1308_v42 = vmul.f32 %v1306_v9, %v1303_v8 }
0x1910   :  { %v1310_v11 = vadd.f32 %v1309_v10, %v1308_v42 }
0x1912   :  { %v1313_v12 = vpack.c.bf16 %v1310_v11, %v1310_v11 }
0x1914   :  { %1315 = vrot.lane.b32.xlu1 %v1313_v12, %s2906_s23 }
0x1986   :  { %v1316_v4 = vpop.permute.xlu1 %1315 }
0x1987   :  { %2657 = vmatmul.mubr.msk.bf16.vlgmr.msra.gmra.mrb[60].mxu1 %vm199_vm2, %v1316_v4 }
0x1988   :  { %2667 = vmatpush3.bf16.msra.mxu1 %v3301_v21  ;;  %2668 = vmatprep.mubr.msk.bf16.mxu1 %vm2901_vm0, %v2898_v5 }
0x1989   :  { %2710 = vmatprep.subr.msk.bf16.mxu1 %vm1624_vm8, %v1615_v54 }
0x1a5a   :  { %v1354_v13 = vpop.f32.mrb[60].mxu1 }
0x1a5b   :  { %v1367_v40 = vadd.f32 %v1354_v13, %v3162_v25  ;;  %v2658_v14 = vpop.f32.mrb[61].mxu1  ;;  %v1360_v19 = vadd.f32 %v1354_v13, %v1312_v18 }
0x1a5c   :  { %v1357_v15 = vpop.f32.mrb[62].mxu1 }
0x1a5d   :  { %1369 = vrot.lane.b32.xlu0 %v1367_v40, %s2905_s19  ;;  %v2659_v16 = vpop.f32.mrb[63].mxu1  ;;  %v2406_v20 = vmul.f32 -1.442695, %v1360_v19  ;;  %v1464_v40 = vld [vmem:[#allocation2 + $0x58] sm:$0xff]  ;;  %v1618_v19 = vld [vmem:[#allocation3 + $0x8] sm:$0xff] }
0x1a5e   :  { %v1617_v16 = vld [vmem:[#allocation3] sm:$0xff] }
0x1a5f   :  { %2786 = vpow2.f32 %v2406_v20 }
0x1a69   :  { %v2787_v22 = vpop.eup %2786 }
0x1a6a   :  { %v1364_v23 = vadd.f32 1.0, %v2787_v22  ;;  %v1619_v22 = vld [vmem:[#allocation3 + $0x10] sm:$0xff] }
0x1a6c   :  { %2788 = vrcp.f32 %v1364_v23 }
0x1a76   :  { %v2789_v24 = vpop.eup %2788 }
0x1a77   :  { %v1379_v31 = vsub.f32 1.0, %v2789_v24  ;;  %v1385_v33 = vmul.f32 %v2789_v24, %v1310_v11 }
0x1acf   :  { %v1370_v26 = vpop.permute.xlu0 %1369 }
0x1ad0   :  { %v1372_v27 = vmul.f32 %v2789_v24, %v1370_v26  ;;  %v1620_v26 = vld [vmem:[#allocation3 + $0x18] sm:$0xff] }
0x1ad2   :  { %1374 = vrot.lane.b32.xlu1 %v1372_v27, %s2904_s14 }
0x1b44   :  { %v1375_v28 = vpop.permute.xlu1 %1374 }
0x1b45   :  { %v1377_v29 = vadd.f32 %v1375_v28, %v1312_v18 }
0x1b47   :  { %2790 = vtanh.f32 %v1377_v29 }
0x1b51   :  { %v2791_v30 = vpop.eup %2790 }
0x1b52   :  { %1381 = vrot.lane.b32.xlu0 %v2791_v30, %s2906_s23 }
0x1bc4   :  { %v1382_v32 = vpop.permute.xlu0 %1381 }
0x1bc5   :  { %v1384_v34 = vmul.f32 %v1382_v32, %v1379_v31 }
0x1bc7   :  { %v1386_v35 = vadd.f32 %v1385_v33, %v1384_v34 }
0x1bc9   :  { %v1389_v36 = vpack.c.bf16 %v1386_v35, %v1386_v35 }
0x1bcb   :  { %1391 = vrot.lane.b32.xlu1 %v1389_v36, %s2906_s23 }
0x1c3d   :  { %v1392_v37 = vpop.permute.xlu1 %1391 }
0x1c3e   :  { %2663 = vmatmul.mubr.msk.bf16.vlgmr.msra.gmra.mrb[60].mxu0 %vm199_vm2, %v1392_v37 }
0x1c3f   :  { %2673 = vmatpush3.bf16.msra.mxu0 %v3301_v21  ;;  %2674 = vmatprep.mubr.msk.bf16.mxu0 %vm2901_vm0, %v2898_v5 }
0x1c40   :  { %2711 = vmatprep.subr.msk.bf16.mxu0 %vm1624_vm8, %v1615_v54 }
0x1d11   :  { %v1430_v38 = vpop.f32.mrb[60].mxu0 }
0x1d12   :  { %v1443_v39 = vadd.f32 %v1430_v38, %v3162_v25  ;;  %v2664_v41 = vpop.f32.mrb[61].mxu0  ;;  %v1436_v46 = vadd.f32 %v1430_v38, %v1388_v45 }
0x1d13   :  { %v1433_v43 = vpop.f32.mrb[62].mxu0 }
0x1d14   :  { %1445 = vrot.lane.b32.xlu0 %v1443_v39, %s2905_s19  ;;  %v2665_v44 = vpop.f32.mrb[63].mxu0  ;;  %v2408_v47 = vmul.f32 -1.442695, %v1436_v46 }
0x1d16   :  { %2792 = vpow2.f32 %v2408_v47 }
0x1d20   :  { %v2793_v48 = vpop.eup %2792 }
0x1d21   :  { %v1440_v49 = vadd.f32 1.0, %v2793_v48 }
0x1d23   :  { %2794 = vrcp.f32 %v1440_v49 }
0x1d2d   :  { %v2795_v50 = vpop.eup %2794 }
0x1d2e   :  { %v1455_v56 = vsub.f32 1.0, %v2795_v50  ;;  %v1461_v58 = vmul.f32 %v2795_v50, %v1386_v35 }
0x1d86   :  { %v1446_v21 = vpop.permute.xlu0 %1445 }
0x1d87   :  { %v1448_v51 = vmul.f32 %v2795_v50, %v1446_v21 }
0x1d89   :  { %1450 = vrot.lane.b32.xlu1 %v1448_v51, %s2904_s14 }
0x1dfb   :  { %v1451_v52 = vpop.permute.xlu1 %1450 }
0x1dfc   :  { %v1453_v53 = vadd.f32 %v1451_v52, %v1388_v45 }
0x1dfe   :  { %2796 = vtanh.f32 %v1453_v53 }
0x1e08   :  { %v2797_v55 = vpop.eup %2796 }
0x1e09   :  { %1457 = vrot.lane.b32.xlu0 %v2797_v55, %s2906_s23 }
0x1e0d   :  { %1710 = vrot.lane.b32.xlu0 %v2417_v60, %s2899_s27 }
0x1e7b   :  { %v1458_v57 = vpop.permute.xlu0 %1457 }
0x1e7c   :  { %v1460_v59 = vmul.f32 %v1458_v57, %v1455_v56 }
0x1e7e   :  { %v3347_v61 = vadd.f32 %v1461_v58, %v1460_v59 }
0x1e7f   :  { %v3365_v8 = vpop.permute.xlu0 %1710 }
0x1e80   :  { %v1465_v62 = vpack.c.bf16 %v3347_v61, %v3347_v61 }
0x1e82   :  { %1467 = vrot.lane.b32.xlu1 %v1465_v62, %s2906_s23 }
0x1ef4   :  { %v1468_v0 = vpop.permute.xlu1 %1467 }
0x1ef5   :  { %2669 = vmatmul.mubr.msk.bf16.vlgmr.msra.gmra.mrb[64].mxu1 %vm199_vm2, %v1468_v0 }
0x1ef6   :  { %2679 = vmatpush3.bf16.msra.mxu1 %v3354_v63  ;;  %2680 = vmatprep.mubr.bf16.mxu1 %v2903_v17 }
0x1ef7   :  { %2712 = vmatprep.subr.msk.bf16.mxu1 %vm1624_vm8, %v1615_v54 }
0x1efd   :  { %2681 = vmatmul.mubr.bf16.vlgmr.msra.gmra.mrb[68].mxu1 %v2903_v17 }
0x1efe   :  { %2691 = vmatpush3.bf16.msra.mxu1 %v3354_v63 }
0x1eff   :  { %2704 = vmatprep.subr.bf16.mxu1 %v2898_v5 }
0x1fc8   :  { %v1506_v1 = vpop.f32.mrb[64].mxu1 }
0x1fc9   :  { %v1519_v2 = vadd.f32 %v1506_v1, %v3162_v25  ;;  %v2670_v3 = vpop.f32.mrb[65].mxu1  ;;  %v1512_v14 = vadd.f32 %v1506_v1, %v1464_v40 }
0x1fca   :  { %v1509_v6 = vpop.f32.mrb[66].mxu1 }
0x1fcb   :  { %1521 = vrot.lane.b32.xlu1 %v1519_v2, %s2905_s19  ;;  %v2671_v7 = vpop.f32.mrb[67].mxu1  ;;  %v2410_v15 = vmul.f32 -1.442695, %v1512_v14 }
0x1fcd   :  { %2798 = vpow2.f32 %v2410_v15 }
0x1fd0   :  { %v2682_v9 = vpop.f32.mrb[68].mxu1 }
0x1fd1   :  { %v1662_v10 = vpop.f32.mrb[69].mxu1  ;;  %v1715_v4 = vadd.f32 %v2682_v9, %v3365_v8  ;;  %v1679_v23 = vadd.f32 %v2682_v9, %v1619_v22 }
0x1fd2   :  { %v1713_v42 = vadd.f32 %v3365_v8, %v1662_v10  ;;  %v2683_v11 = vpop.f32.mrb[70].mxu1  ;;  %v1677_v18 = vadd.f32 %v1662_v10, %v1617_v16 }
0x1fd3   :  { %v1665_v17 = vpop.f32.mrb[71].mxu1  ;;  %v1716_v13 = vadd.f32 %v2683_v11, %v3365_v8  ;;  %v1680_v27 = vadd.f32 %v2683_v11, %v1620_v26  ;;  %v2415_v29 = vmul.f32 -1.442695, %v1679_v23 }
0x1fd4   :  { %v1714_v12 = vadd.f32 %v3365_v8, %v1665_v17  ;;  %1721 = vrot.lane.b32.xlu0 %v1713_v42, %s2907_s6  ;;  %v1678_v20 = vadd.f32 %v1665_v17, %v1618_v19  ;;  %v2413_v24 = vmul.f32 -1.442695, %v1677_v18 }
0x1fd5   :  { %v2416_v31 = vmul.f32 -1.442695, %v1680_v27 }
0x1fd6   :  { %1723 = vrot.lane.b32.xlu1 %v1714_v12, %s2907_s6  ;;  %v2414_v28 = vmul.f32 -1.442695, %v1678_v20  ;;  %2800 = vpow2.f32 %v2413_v24 }
0x1fd7   :  { %v2799_v30 = vpop.eup %2798 }
0x1fd8   :  { %1725 = vrot.lane.b32.xlu0 %v1715_v4, %s2907_s6  ;;  %2802 = vpow2.f32 %v2414_v28  ;;  %v1516_v32 = vadd.f32 1.0, %v2799_v30 }
0x1fd9   :  { %2804 = vpow2.f32 %v2415_v29 }
0x1fda   :  { %1727 = vrot.lane.b32.xlu1 %v1716_v13, %s2907_s6  ;;  %2806 = vpow2.f32 %v2416_v31 }
0x1fdb   :  { %2808 = vrcp.f32 %v1516_v32 }
0x1fe0   :  { %v2801_v33 = vpop.eup %2800 }
0x1fe1   :  { %v1693_v35 = vadd.f32 1.0, %v2801_v33 }
0x1fe2   :  { %v2803_v34 = vpop.eup %2802 }
0x1fe3   :  { %v2805_v36 = vpop.eup %2804  ;;  %v1694_v37 = vadd.f32 1.0, %v2803_v34  ;;  %2810 = vrcp.f32 %v1693_v35 }
0x1fe4   :  { %v2807_v38 = vpop.eup %2806  ;;  %v1695_v39 = vadd.f32 1.0, %v2805_v36 }
0x1fe5   :  { %v2809_v41 = vpop.eup %2808  ;;  %v1696_v44 = vadd.f32 1.0, %v2807_v38  ;;  %2812 = vrcp.f32 %v1694_v37 }
0x1fe6   :  { %2814 = vrcp.f32 %v1695_v39  ;;  %v1531_v17 = vsub.f32 1.0, %v2809_v41  ;;  %v1537_v4 = vmul.f32 %v2809_v41, %v3347_v61 }
0x1fe7   :  { %2816 = vrcp.f32 %v1696_v44 }
0x1fed   :  { %v2811_v46 = vpop.eup %2810 }
0x1fee   :  { %v1761_v15 = vsub.f32 1.0, %v2811_v46 }
0x1fef   :  { %v2813_v49 = vpop.eup %2812 }
0x1ff0   :  { %v2815_v51 = vpop.eup %2814  ;;  %v1786_v23 = vmul.f32 0.0, %v2813_v49 }
0x1ff1   :  { %v2817_v54 = vpop.eup %2816  ;;  %v1787_v32 = vmul.f32 0.0, %v2815_v51 }
0x1ff2   :  { %v1764_v30 = vsub.f32 1.0, %v2817_v54  ;;  %v1788_v33 = vmul.f32 0.0, %v2817_v54 }
0x203d   :  { %v1522_v43 = vpop.permute.xlu1 %1521 }
0x203e   :  { %v1524_v45 = vmul.f32 %v2809_v41, %v1522_v43 }
0x2040   :  { %1526 = vrot.lane.b32.xlu0 %v1524_v45, %s2904_s14 }
0x2046   :  { %v1722_v47 = vpop.permute.xlu0 %1721 }
0x2047   :  { %v1733_v48 = vmul.f32 %v2811_v46, %v1722_v47 }
0x2048   :  { %v1724_v50 = vpop.permute.xlu1 %1723 }
0x2049   :  { %v1734_v21 = vmul.f32 %v2813_v49, %v1724_v50  ;;  %1741 = vrot.lane.b32.xlu1 %v1733_v48, %s2899_s27 }
0x204a   :  { %v1726_v52 = vpop.permute.xlu0 %1725 }
0x204b   :  { %v1735_v53 = vmul.f32 %v2815_v51, %v1726_v52  ;;  %1743 = vrot.lane.b32.xlu0 %v1734_v21, %s2899_s27 }
0x204c   :  { %v1728_v55 = vpop.permute.xlu1 %1727 }
0x204d   :  { %v1736_v56 = vmul.f32 %v2817_v54, %v1728_v55  ;;  %1745 = vrot.lane.b32.xlu1 %v1735_v53, %s2899_s27  ;;  %v1794_v54 = vld [vmem:[#allocation3 + $0x20] sm:$0xff] }
0x204f   :  { %1747 = vrot.lane.b32.xlu0 %v1736_v56, %s2899_s27  ;;  %v1795_v56 = vld [vmem:[#allocation3 + $0x28] sm:$0xff] }
0x20b2   :  { %v1527_v57 = vpop.permute.xlu0 %1526 }
0x20b3   :  { %v1529_v58 = vadd.f32 %v1527_v57, %v1464_v40 }
0x20b5   :  { %2818 = vtanh.f32 %v1529_v58  ;;  %v1796_v58 = vld [vmem:[#allocation3 + $0x30] sm:$0xff] }
0x20bb   :  { %v1742_v59 = vpop.permute.xlu1 %1741 }
0x20bc   :  { %v1753_v60 = vadd.f32 %v1742_v59, %v1617_v16 }
0x20bd   :  { %v1744_v62 = vpop.permute.xlu0 %1743 }
0x20be   :  { %2820 = vtanh.f32 %v1753_v60  ;;  %v1754_v0 = vadd.f32 %v1744_v62, %v1618_v19  ;;  %v1762_v19 = vsub.f32 1.0, %v2813_v49  ;;  %v1797_v62 = vld [vmem:[#allocation3 + $0x38] sm:$0xff] }
0x20bf   :  { %v2819_v1 = vpop.eup %2818  ;;  %v1746_v2 = vpop.permute.xlu1 %1745 }
0x20c0   :  { %2822 = vtanh.f32 %v1754_v0  ;;  %v1755_v3 = vadd.f32 %v1746_v2, %v1619_v22  ;;  %1533 = vrot.lane.b32.xlu1 %v2819_v1, %s2906_s23  ;;  %v1785_v22 = vmul.f32 0.0, %v2811_v46 }
0x20c1   :  { %v1748_v6 = vpop.permute.xlu0 %1747 }
0x20c2   :  { %2824 = vtanh.f32 %v1755_v3  ;;  %v1756_v7 = vadd.f32 %v1748_v6, %v1620_v26  ;;  %v1763_v26 = vsub.f32 1.0, %v2815_v51 }
0x20c4   :  { %2826 = vtanh.f32 %v1756_v7 }
0x20c8   :  { %v2821_v9 = vpop.eup %2820 }
0x20c9   :  { %1769 = vrot.lane.b32.xlu0 %v2821_v9, %s2908_s7 }
0x20ca   :  { %v2823_v10 = vpop.eup %2822 }
0x20cb   :  { %1771 = vrot.lane.b32.xlu1 %v2823_v10, %s2908_s7 }
0x20cc   :  { %v2825_v42 = vpop.eup %2824 }
0x20cd   :  { %1773 = vrot.lane.b32.xlu0 %v2825_v42, %s2908_s7 }
0x20ce   :  { %v2827_v11 = vpop.eup %2826 }
0x20cf   :  { %1775 = vrot.lane.b32.xlu1 %v2827_v11, %s2908_s7 }
0x2132   :  { %v1534_v12 = vpop.permute.xlu1 %1533 }
0x2133   :  { %v1536_v13 = vmul.f32 %v1534_v12, %v1531_v17 }
0x2135   :  { %v3386_v40 = vadd.f32 %v1537_v4, %v1536_v13 }
0x2137   :  { %v1541_v14 = vpack.c.bf16 %v3386_v40, %v3386_v40 }
0x2139   :  { %1543 = vrot.lane.b32.xlu0 %v1541_v14, %s2906_s23 }
0x213b   :  { %v1770_v16 = vpop.permute.xlu0 %1769 }
0x213c   :  { %v1781_v18 = vmul.f32 %v1770_v16, %v1761_v15 }
0x213d   :  { %v1772_v20 = vpop.permute.xlu1 %1771 }
0x213e   :  { %v1782_v24 = vmul.f32 %v1772_v20, %v1762_v19  ;;  %v3391_v28 = vadd.f32 %v1785_v22, %v1781_v18 }
0x213f   :  { %v1774_v27 = vpop.permute.xlu0 %1773 }
0x2140   :  { %v3393_v61 = vadd.f32 %v1786_v23, %v1782_v24  ;;  %v1783_v29 = vmul.f32 %v1774_v27, %v1763_v26 }
0x2141   :  { %v1776_v31 = vpop.permute.xlu1 %1775 }
0x2142   :  { %v1784_v34 = vmul.f32 %v1776_v31, %v1764_v30  ;;  %v1798_v35 = vpack.c.bf16 %v3393_v61, %v3391_v28  ;;  %v3397_v36 = vadd.f32 %v1787_v32, %v1783_v29 }
0x2144   :  { %v3399_v37 = vadd.f32 %v1788_v33, %v1784_v34  ;;  %1802 = vrot.lane.b32.xlu1 %v1798_v35, %s2908_s7 }
0x2146   :  { %v1799_v38 = vpack.c.bf16 %v3399_v37, %v3397_v36 }
0x2148   :  { %1804 = vrot.lane.b32.xlu0 %v1799_v38, %s2908_s7 }
0x21ab   :  { %v1544_v39 = vpop.permute.xlu0 %1543 }
0x21ac   :  { %2675 = vmatmul.mubr.msk.bf16.vlgmr.msra.gmra.mrb[64].mxu0 %vm199_vm2, %v1544_v39 }
0x21ad   :  { %2685 = vmatpush3.bf16.msra.mxu0 %v3354_v63 }
0x21ae   :  { %2696 = vmatprep.subr.bf16.mxu0 %v2898_v5 }
0x21b6   :  { %v1803_v41 = vpop.permute.xlu1 %1802 }
0x21b7   :  { %2686 = vmatprep.mubr.msk.bf16.mxu0 %vm1621_vm9, %v1803_v41 }
0x21ba   :  { %v1805_v43 = vpop.permute.xlu0 %1804 }
0x21bb   :  { %2687 = vmatmul.mubr.msk.bf16.vlgmr.msra.gmra.mrb[68].mxu0 %vm1621_vm9, %v1805_v43 }
0x21bc   :  { %2700 = vmatprep.mubr.msk.bf16.mxu0 %vm2901_vm0, %v2898_v5 }
0x227f   :  { %v3412_v44 = vpop.f32.mrb[64].mxu0 }
0x2280   :  { %v2676_v45 = vpop.f32.mrb[65].mxu0 }
0x2281   :  { %v1585_v46 = vpop.f32.mrb[66].mxu0 }
0x2282   :  { %v2677_v47 = vpop.f32.mrb[67].mxu0 }
0x228e   :  { %v2688_v48 = vpop.f32.mrb[68].mxu0 }
0x228f   :  { %v1846_v49 = vpop.f32.mrb[69].mxu0  ;;  %v1891_v52 = vadd.f32 %v2688_v48, %v3365_v8  ;;  %v1863_v59 = vadd.f32 %v2688_v48, %v1796_v58 }
0x2290   :  { %v1889_v63 = vadd.f32 %v1846_v49, %v3365_v8  ;;  %v2689_v50 = vpop.f32.mrb[70].mxu0  ;;  %v1861_v55 = vadd.f32 %v1846_v49, %v1794_v54 }
0x2291   :  { %v1849_v21 = vpop.f32.mrb[71].mxu0  ;;  %v1892_v53 = vadd.f32 %v2689_v50, %v3365_v8  ;;  %v1864_v0 = vadd.f32 %v2689_v50, %v1797_v62  ;;  %v2422_v2 = vmul.f32 -1.442695, %v1863_v59 }
0x2292   :  { %v1890_v51 = vadd.f32 %v1849_v21, %v3365_v8  ;;  %1897 = vrot.lane.b32.xlu1 %v1889_v63, %s2907_s6  ;;  %v1862_v57 = vadd.f32 %v1849_v21, %v1795_v56  ;;  %v2420_v60 = vmul.f32 -1.442695, %v1861_v55 }
0x2293   :  { %v2423_v3 = vmul.f32 -1.442695, %v1864_v0  ;;  %v1595_v0 = vadd.f32 %v3412_v44, %v3162_v25 }
0x2294   :  { %1899 = vrot.lane.b32.xlu0 %v1890_v51, %s2907_s6  ;;  %v2421_v1 = vmul.f32 -1.442695, %v1862_v57  ;;  %2828 = vpow2.f32 %v2420_v60 }
0x2296   :  { %1901 = vrot.lane.b32.xlu1 %v1891_v52, %s2907_s6  ;;  %2830 = vpow2.f32 %v2421_v1 }
0x2297   :  { %2832 = vpow2.f32 %v2422_v2  ;;  %v3455_v2 = vld [vmem:[#allocation2 + $0x60] sm:$0xff] }
0x2298   :  { %1903 = vrot.lane.b32.xlu0 %v1892_v53, %s2907_s6  ;;  %2834 = vpow2.f32 %v2423_v3  ;;  %v1588_v25 = vadd.f32 %v3412_v44, %v3455_v2 }
0x229a   :  { %v2412_v3 = vmul.f32 -1.442695, %v1588_v25 }
0x229e   :  { %v2829_v6 = vpop.eup %2828 }
0x229f   :  { %v1877_v9 = vadd.f32 1.0, %v2829_v6 }
0x22a0   :  { %v2831_v7 = vpop.eup %2830 }
0x22a1   :  { %v2833_v10 = vpop.eup %2832  ;;  %v1878_v42 = vadd.f32 1.0, %v2831_v7  ;;  %2836 = vrcp.f32 %v1877_v9 }
0x22a2   :  { %v2835_v11 = vpop.eup %2834  ;;  %v1879_v17 = vadd.f32 1.0, %v2833_v10 }
0x22a3   :  { %v1880_v12 = vadd.f32 1.0, %v2835_v11  ;;  %2838 = vrcp.f32 %v1878_v42 }
0x22a4   :  { %2840 = vrcp.f32 %v1879_v17 }
0x22a5   :  { %2842 = vrcp.f32 %v1880_v12 }
0x22ab   :  { %v2837_v4 = vpop.eup %2836 }
0x22ac   :  { %v1937_v45 = vsub.f32 1.0, %v2837_v4  ;;  %v1961_v63 = vmul.f32 %v2837_v4, %v3391_v28 }
0x22ad   :  { %v2839_v15 = vpop.eup %2838 }
0x22ae   :  { %v2841_v19 = vpop.eup %2840  ;;  %v1938_v48 = vsub.f32 1.0, %v2839_v15  ;;  %v1962_v50 = vmul.f32 %v2839_v15, %v3393_v61 }
0x22af   :  { %v2843_v23 = vpop.eup %2842  ;;  %v1939_v51 = vsub.f32 1.0, %v2841_v19 }
0x22b0   :  { %v1964_v59 = vmul.f32 %v2843_v23, %v3399_v37 }
0x2304   :  { %v1898_v13 = vpop.permute.xlu1 %1897 }
0x2305   :  { %v1909_v14 = vmul.f32 %v2837_v4, %v1898_v13 }
0x2306   :  { %v1900_v16 = vpop.permute.xlu0 %1899 }
0x2307   :  { %v1910_v18 = vmul.f32 %v2839_v15, %v1900_v16  ;;  %1917 = vrot.lane.b32.xlu1 %v1909_v14, %s2899_s27  ;;  %v1970_v16 = vld [vmem:[#allocation3 + $0x40] sm:$0xff] }
0x2308   :  { %v1902_v20 = vpop.permute.xlu1 %1901 }
0x2309   :  { %v1911_v22 = vmul.f32 %v2841_v19, %v1902_v20  ;;  %1919 = vrot.lane.b32.xlu0 %v1910_v18, %s2899_s27 }
0x230a   :  { %v1904_v24 = vpop.permute.xlu0 %1903 }
0x230b   :  { %v1912_v26 = vmul.f32 %v2843_v23, %v1904_v24  ;;  %1921 = vrot.lane.b32.xlu1 %v1911_v22, %s2899_s27  ;;  %v1972_v22 = vld [vmem:[#allocation3 + $0x50] sm:$0xff] }
0x230d   :  { %1923 = vrot.lane.b32.xlu0 %v1912_v26, %s2899_s27  ;;  %v1973_v26 = vld [vmem:[#allocation3 + $0x58] sm:$0xff] }
0x2379   :  { %v1918_v27 = vpop.permute.xlu1 %1917 }
0x237a   :  { %v1929_v29 = vadd.f32 %v1918_v27, %v1794_v54 }
0x237b   :  { %v1920_v30 = vpop.permute.xlu0 %1919 }
0x237c   :  { %2844 = vtanh.f32 %v1929_v29  ;;  %v1930_v31 = vadd.f32 %v1920_v30, %v1795_v56  ;;  %v1940_v56 = vsub.f32 1.0, %v2843_v23 }
0x237d   :  { %v1922_v32 = vpop.permute.xlu1 %1921 }
0x237e   :  { %2846 = vtanh.f32 %v1930_v31  ;;  %v1931_v33 = vadd.f32 %v1922_v32, %v1796_v58  ;;  %v1963_v58 = vmul.f32 %v2841_v19, %v3397_v36  ;;  %v1971_v19 = vld [vmem:[#allocation3 + $0x48] sm:$0xff] }
0x237f   :  { %v1924_v34 = vpop.permute.xlu0 %1923 }
0x2380   :  { %2848 = vtanh.f32 %v1931_v33  ;;  %v1932_v35 = vadd.f32 %v1924_v34, %v1797_v62 }
0x2382   :  { %2850 = vtanh.f32 %v1932_v35 }
0x2383   :  { %2852 = vpow2.f32 %v2412_v3 }
0x2386   :  { %v2845_v38 = vpop.eup %2844 }
0x2387   :  { %1945 = vrot.lane.b32.xlu1 %v2845_v38, %s2908_s7 }
0x2388   :  { %v2847_v39 = vpop.eup %2846 }
0x2389   :  { %1947 = vrot.lane.b32.xlu0 %v2847_v39, %s2908_s7 }
0x238a   :  { %v2849_v41 = vpop.eup %2848 }
0x238b   :  { %1949 = vrot.lane.b32.xlu1 %v2849_v41, %s2908_s7 }
0x238c   :  { %v2851_v43 = vpop.eup %2850 }
0x238d   :  { %1951 = vrot.lane.b32.xlu0 %v2851_v43, %s2908_s7  ;;  %v2853_v6 = vpop.eup %2852 }
0x238e   :  { %v1592_v7 = vadd.f32 1.0, %v2853_v6 }
0x2390   :  { %2854 = vrcp.f32 %v1592_v7 }
0x239a   :  { %v3466_v14 = vpop.eup %2854 }
0x239b   :  { %v1607_v7 = vsub.f32 1.0, %v3466_v14 }
0x23f9   :  { %v1946_v46 = vpop.permute.xlu1 %1945 }
0x23fa   :  { %v1957_v47 = vmul.f32 %v1946_v46, %v1937_v45 }
0x23fb   :  { %v1948_v49 = vpop.permute.xlu0 %1947 }
0x23fc   :  { %v1958_v21 = vmul.f32 %v1948_v49, %v1938_v48  ;;  %v3432_v53 = vadd.f32 %v1961_v63, %v1957_v47 }
0x23fd   :  { %v1950_v52 = vpop.permute.xlu1 %1949 }
0x23fe   :  { %v3434_v54 = vadd.f32 %v1962_v50, %v1958_v21  ;;  %v1959_v55 = vmul.f32 %v1950_v52, %v1939_v51 }
0x23ff   :  { %v1952_v57 = vpop.permute.xlu0 %1951 }
0x2400   :  { %v1960_v60 = vmul.f32 %v1952_v57, %v1940_v56  ;;  %v1974_v28 = vpack.c.bf16 %v3434_v54, %v3432_v53  ;;  %v3440_v62 = vadd.f32 %v1963_v58, %v1959_v55 }
0x2402   :  { %v3442_v61 = vadd.f32 %v1964_v59, %v1960_v60  ;;  %1978 = vrot.lane.b32.xlu1 %v1974_v28, %s2908_s7 }
0x2404   :  { %v1975_v1 = vpack.c.bf16 %v3442_v61, %v3440_v62 }
0x2406   :  { %1597 = vrot.lane.b32.xlu1 %v1595_v0, %s2905_s19  ;;  %1980 = vrot.lane.b32.xlu0 %v1975_v1, %s2908_s7 }
0x2474   :  { %v1979_v36 = vpop.permute.xlu1 %1978 }
0x2475   :  { %2692 = vmatprep.mubr.msk.bf16.mxu1 %vm1621_vm9, %v1979_v36 }
0x2478   :  { %v1981_v37 = vpop.permute.xlu0 %1980  ;;  %v1598_v44 = vpop.permute.xlu1 %1597 }
0x2479   :  { %2693 = vmatmul.mubr.msk.bf16.vlgmr.msra.gmra.mrb[72].mxu1 %vm1621_vm9, %v1981_v37  ;;  %v1600_v15 = vmul.f32 %v3466_v14, %v1598_v44 }
0x247a   :  { %2706 = vmatprep.mubr.msk.bf16.mxu1 %vm2901_vm0, %v2898_v5 }
0x254c   :  { %v2694_v9 = vpop.f32.mrb[72].mxu1 }
0x254d   :  { %v2022_v10 = vpop.f32.mrb[73].mxu1  ;;  %v2067_v4 = vadd.f32 %v2694_v9, %v3365_v8  ;;  %v2039_v23 = vadd.f32 %v2694_v9, %v1972_v22 }
0x254e   :  { %v2065_v42 = vadd.f32 %v2022_v10, %v3365_v8  ;;  %v2695_v11 = vpop.f32.mrb[74].mxu1  ;;  %v2037_v18 = vadd.f32 %v2022_v10, %v1970_v16 }
0x254f   :  { %v2025_v17 = vpop.f32.mrb[75].mxu1  ;;  %v2068_v13 = vadd.f32 %v2695_v11, %v3365_v8  ;;  %v2040_v27 = vadd.f32 %v2695_v11, %v1973_v26  ;;  %v2428_v29 = vmul.f32 -1.442695, %v2039_v23 }
0x2550   :  { %v2066_v12 = vadd.f32 %v2025_v17, %v3365_v8  ;;  %2073 = vrot.lane.b32.xlu0 %v2065_v42, %s2907_s6  ;;  %v2038_v20 = vadd.f32 %v2025_v17, %v1971_v19  ;;  %v2426_v24 = vmul.f32 -1.442695, %v2037_v18  ;;  %v1613_v42 = vmul.f32 %v3466_v14, %v3386_v40 }
0x2551   :  { %v2429_v30 = vmul.f32 -1.442695, %v2040_v27 }
0x2552   :  { %2075 = vrot.lane.b32.xlu1 %v2066_v12, %s2907_s6  ;;  %v2427_v8 = vmul.f32 -1.442695, %v2038_v20  ;;  %2856 = vpow2.f32 %v2426_v24  ;;  %v2730_v12 = vld [vmem:[%s3528_s1 + $0x30] sm:$0xff]  }
0x2553   :  { %2697 = vmatpush3.bf16.msra.mxu0 %v2730_v12 }
0x2554   :  { %2077 = vrot.lane.b32.xlu0 %v2067_v4, %s2907_s6  ;;  %2858 = vpow2.f32 %v2427_v8  ;;  %2698 = vmatprep.subr.bf16.mxu0 %v2898_v5  ;;  %v2731_v4 = vld [vmem:[%s3528_s1 + $0x38] sm:$0xff]  }
0x2555   :  { %2860 = vpow2.f32 %v2428_v29 }
0x2556   :  { %2079 = vrot.lane.b32.xlu1 %v2068_v13, %s2907_s6  ;;  %2862 = vpow2.f32 %v2429_v30 }
0x2557   :  { %2699 = vmatpush3.bf16.msra.mxu0 %v2731_v4 }
0x2558   :  { %1602 = vrot.lane.b32.xlu0 %v1600_v15, %s2904_s14 }
0x255c   :  { %v2857_v31 = vpop.eup %2856 }
0x255d   :  { %v2053_v33 = vadd.f32 1.0, %v2857_v31 }
0x255e   :  { %v2859_v32 = vpop.eup %2858 }
0x255f   :  { %v2861_v34 = vpop.eup %2860  ;;  %v2054_v35 = vadd.f32 1.0, %v2859_v32  ;;  %2864 = vrcp.f32 %v2053_v33 }
0x2560   :  { %v2863_v38 = vpop.eup %2862  ;;  %v2055_v39 = vadd.f32 1.0, %v2861_v34 }
0x2561   :  { %v2056_v41 = vadd.f32 1.0, %v2863_v38  ;;  %2866 = vrcp.f32 %v2054_v35 }
0x2562   :  { %2868 = vrcp.f32 %v2055_v39 }
0x2563   :  { %2870 = vrcp.f32 %v2056_v41 }
0x2569   :  { %v2865_v43 = vpop.eup %2864 }
0x256a   :  { %v2113_v44 = vsub.f32 1.0, %v2865_v43  ;;  %v2137_v13 = vmul.f32 %v2865_v43, %v3432_v53 }
0x256b   :  { %v2867_v47 = vpop.eup %2866 }
0x256c   :  { %v2869_v63 = vpop.eup %2868  ;;  %v2114_v15 = vsub.f32 1.0, %v2867_v47 }
0x256d   :  { %v2871_v51 = vpop.eup %2870  ;;  %v2139_v5 = vmul.f32 %v2869_v63, %v3440_v62 }
0x256e   :  { %v2116_v27 = vsub.f32 1.0, %v2871_v51  ;;  %v2140_v53 = vmul.f32 %v2871_v51, %v3442_v61 }
0x25c2   :  { %v2074_v45 = vpop.permute.xlu0 %2073 }
0x25c3   :  { %v2085_v46 = vmul.f32 %v2865_v43, %v2074_v45  ;;  %v2260_v43 = vld [vmem:[%s3528_s1 + $0x40] sm:$0xf] }
0x25c4   :  { %v2076_v48 = vpop.permute.xlu1 %2075  ;;  %v2271_v45 = vsel %vm400_vm5, %v2260_v43, 0 }
0x25c5   :  { %v2086_v49 = vmul.f32 %v2867_v47, %v2076_v48  ;;  %2093 = vrot.lane.b32.xlu1 %v2085_v46, %s2899_s27  ;;  %2705 = vmatpush3.bf16.msra.mxu1 %v2271_v45  ;;  %v2437_v46 = vld [vmem:[%s3527_s0 + $0x60] sm:$0xff] }
0x25c6   :  { %v2078_v50 = vpop.permute.xlu0 %2077  ;;  %v2430_v48 = vld [vmem:[%s3529_s2 + $0x5] ss:$0 sm:$0xff] }
0x25c7   :  { %v2087_v21 = vmul.f32 %v2869_v63, %v2078_v50  ;;  %2095 = vrot.lane.b32.xlu0 %v2086_v49, %s2899_s27  ;;  %v2438_v49 = vld [vmem:[%s3527_s0 + $0x68] sm:$0xff] }
0x25c8   :  { %v2080_v52 = vpop.permute.xlu1 %2079 }
0x25c9   :  { %v2088_v55 = vmul.f32 %v2871_v51, %v2080_v52  ;;  %2097 = vrot.lane.b32.xlu1 %v2087_v21, %s2899_s27  ;;  %v2439_v51 = vld [vmem:[%s3527_s0 + $0x70] sm:$0xff]  ;;  %v2252_v52 = vstv %s2435_s16 }
0x25ca   :  { %v1603_v56 = vpop.permute.xlu0 %1602 }
0x25cb   :  { %v1605_v57 = vadd.f32 %v1603_v56, %v3455_v2  ;;  %2099 = vrot.lane.b32.xlu0 %v2088_v55, %s2899_s27 }
0x25cd   :  { %2872 = vtanh.f32 %v1605_v57 }
0x25d7   :  { %v2873_v58 = vpop.eup %2872 }
0x25d8   :  { %1609 = vrot.lane.b32.xlu1 %v2873_v58, %s2906_s23  ;;  %v2440_v58 = vld [vmem:[%s3527_s0 + $0x78] sm:$0xff] }
0x2637   :  { %v2094_v59 = vpop.permute.xlu1 %2093 }
0x2638   :  { %v2105_v60 = vadd.f32 %v2094_v59, %v1970_v16  ;;  %v2257_v59 = vstv %s2436_s17 }
0x2639   :  { %v2096_v28 = vpop.permute.xlu0 %2095 }
0x263a   :  { %2874 = vtanh.f32 %v2105_v60  ;;  %v2106_v0 = vadd.f32 %v2096_v28, %v1971_v19  ;;  %v2138_v19 = vmul.f32 %v2867_v47, %v3434_v54 }
0x263b   :  { %v2098_v1 = vpop.permute.xlu1 %2097 }
0x263c   :  { %2876 = vtanh.f32 %v2106_v0  ;;  %v2107_v36 = vadd.f32 %v2098_v1, %v1972_v22  ;;  %v2115_v22 = vsub.f32 1.0, %v2869_v63  ;;  %v2247_v63 = vstv %s2434_s15 }
0x263d   :  { %v2100_v37 = vpop.permute.xlu0 %2099  ;;  %v2248_v56 = vmul.f32 %v2438_v49, %v2247_v63  ;;  %v2253_v0 = vmul.f32 %v2439_v51, %v2252_v52 }
0x263e   :  { %2878 = vtanh.f32 %v2107_v36  ;;  %v2108_v25 = vadd.f32 %v2100_v37, %v1973_v26  ;;  %v2258_v37 = vmul.f32 %v2440_v58, %v2257_v59 }
0x2640   :  { %2880 = vtanh.f32 %v2108_v25 }
0x2644   :  { %v2875_v3 = vpop.eup %2874 }
0x2645   :  { %2121 = vrot.lane.b32.xlu0 %v2875_v3, %s2908_s7 }
0x2646   :  { %v2877_v2 = vpop.eup %2876 }
0x2647   :  { %2123 = vrot.lane.b32.xlu1 %v2877_v2, %s2908_s7 }
0x2648   :  { %v2879_v6 = vpop.eup %2878 }
0x2649   :  { %2125 = vrot.lane.b32.xlu0 %v2879_v6, %s2908_s7  ;;  %v2441_v6 = vld [vmem:[%s3529_s2 + $0x6] ss:$0 sm:$0xff] }
0x264a   :  { %v2881_v9 = vpop.eup %2880  ;;  %v1610_v10 = vpop.permute.xlu1 %1609 }
0x264b   :  { %v1612_v11 = vmul.f32 %v1610_v10, %v1607_v7  ;;  %2127 = vrot.lane.b32.xlu1 %v2881_v9, %s2908_s7 }
0x264d   :  { %v1614_v17 = vadd.f32 %v1613_v42, %v1612_v11 }
0x264f   :  { %2146 = vrot.lane.b32.xlu0 %v1614_v17, %s2906_s23 }
0x26b7   :  { %v2122_v40 = vpop.permute.xlu0 %2121 }
0x26b8   :  { %v2133_v14 = vmul.f32 %v2122_v40, %v2113_v44 }
0x26b9   :  { %v2124_v16 = vpop.permute.xlu1 %2123 }
0x26ba   :  { %v2141_v18 = vadd.f32 %v2137_v13, %v2133_v14  ;;  %v2134_v20 = vmul.f32 %v2124_v16, %v2114_v15 }
0x26bb   :  { %v2126_v23 = vpop.permute.xlu0 %2125 }
0x26bc   :  { %v2142_v24 = vadd.f32 %v2138_v19, %v2134_v20  ;;  %v2135_v26 = vmul.f32 %v2126_v23, %v2115_v22  ;;  %2150 = vrot.lane.b32.xlu1 %v2141_v18, %s2909_s12 }
0x26bd   :  { %v2128_v8 = vpop.permute.xlu1 %2127 }
0x26be   :  { %v2143_v29 = vadd.f32 %v2139_v5, %v2135_v26  ;;  %v2136_v30 = vmul.f32 %v2128_v8, %v2116_v27  ;;  %2154 = vrot.lane.b32.xlu0 %v2142_v24, %s2902_s9 }
0x26c0   :  { %v2144_v31 = vadd.f32 %v2140_v53, %v2136_v30  ;;  %2158 = vrot.lane.b32.xlu1 %v2143_v29, %s2910_s13 }
0x26c1   :  { %v2147_v54 = vpop.permute.xlu0 %2146 }
0x26c2   :  { %2162 = vrot.lane.b32.xlu0 %v2144_v31, %s2900_s28  ;;  %s2236_s28 = sld [smem:[#allocation4]] }
0x26c8   :  { %v2242_v47 = vstv %s2236_s28 }
0x26c9   :  { %v2243_v50 = vmul.f32 %v2437_v46, %v2242_v47 }
0x272e   :  { %v2151_v32 = vpop.permute.xlu1 %2150 }
0x272f   :  { %v2165_v62 = vsel %vm199_vm2, %v2147_v54, %v2151_v32 }
0x2730   :  { %v2155_v33 = vpop.permute.xlu0 %2154 }
0x2731   :  { %v2167_v34 = vsel %vm2166_vm10, %v2165_v62, %v2155_v33 }
0x2732   :  { %v2159_v35 = vpop.permute.xlu1 %2158 }
0x2733   :  { %v2168_v38 = vsel %vm214_vm3, %v2167_v34, %v2159_v35 }
0x2734   :  { %v2163_v61 = vpop.permute.xlu0 %2162 }
0x2735   :  { %v2170_v39 = vsel %vm2169_vm11, %v2168_v38, %v2163_v61 }
0x2736   :  { %v2175_v41 = vpack.c.bf16 %v2170_v39, %v2170_v39 }
0x2738   :  { %2701 = vmatmul.mubr.msk.bf16.vlgmr.msra.gmra.mrb[72].mxu0 %vm250_vm4, %v2175_v41 }
0x280b   :  { %v2230_v21 = vpop.f32.mrb[72].mxu0 }
0x280c   :  { %v2231_v55 = vadd.f32 %v2430_v48, %v2230_v21  ;;  %v2702_v57 = vpop.f32.mrb[73].mxu0 }
0x280d   :  { %v2233_v60 = vpop.f32.mrb[74].mxu0 }
0x280e   :  { %v2244_v28 = vadd.f32 %v2243_v50, %v2231_v55  ;;  %v2703_v1 = vpop.f32.mrb[75].mxu0 }
0x2810   :  { %v2249_v36 = vadd.f32 %v2248_v56, %v2244_v28 }
0x2812   :  { %v2254_v25 = vadd.f32 %v2253_v0, %v2249_v36 }
0x2814   :  { %v2259_v3 = vadd.f32 %v2258_v37, %v2254_v25 }
0x2816   :  { %v2261_v2 = vpack.c.bf16 %v2259_v3, %v2259_v3 }
0x2818   :  { %2707 = vmatmul.mubr.msk.bf16.vlgmr.msra.gmra.mrb[76].mxu1 %vm177_vm1, %v2261_v2 }
0x28eb   :  { %v2307_v7 = vpop.f32.mrb[76].mxu1 }
0x28ec   :  { %v2308_v9 = vadd.f32 %v2441_v6, %v2307_v7  ;;  %v2708_v10 = vpop.f32.mrb[77].mxu1 }
0x28ed   :  { %v2310_v42 = vpop.f32.mrb[78].mxu1 }
0x28ee   :  { %v2313_v11 = vmax.f32 %v2308_v9, 0.0  ;;  %v2709_v17 = vpop.f32.mrb[79].mxu1 }
0x28f0   :  { %2315 = vst.msk [vmem:[%s3531_s4] sm:$0xff] %vm2314_vm12, %v2313_v11 }
0x28f1   :  { %2320 = vsyncpa [#allocation5], 1 }

</bundles_post_ra>
